<compile_context>
chip_gen: v5e
topology: v5e:2x2
jax: 0.10.0
libtpu: 0.0.40
codegen_flags: <defaults>
</compile_context>

<pallas_src>
import functools
import numpy as np
import jax
import jax.numpy as jnp
from jax.experimental import pallas as pl
from jax.experimental.pallas import tpu as pltpu


def _round_up(x, m):
    return ((x + m - 1) // m) * m


# ----------------------------------------------------------------------------
# Pallas kernels
# ----------------------------------------------------------------------------

def _matmul_bias_kernel(a_ref, b_ref, bias_ref, o_ref, acc_ref, *, relu):
    """o = relu?((A @ B) + bias) with K-tiled f32 accumulation."""
    @pl.when(pl.program_id(2) == 0)
    def _init():
        acc_ref[...] = jnp.zeros_like(acc_ref)

    acc_ref[...] += jnp.dot(a_ref[...], b_ref[...],
                            preferred_element_type=jnp.float32)

    @pl.when(pl.program_id(2) == pl.num_programs(2) - 1)
    def _finalize():
        out = acc_ref[...] + bias_ref[...]
        if relu:
            out = jnp.maximum(out, 0.0)
        o_ref[...] = out.astype(o_ref.dtype)


def _matmul_bias_res_relu_kernel(a_ref, b_ref, bias_ref, r_ref, o_ref, acc_ref):
    """o = relu((A @ B) + bias + residual) -- conv3 + residual + ReLU fused."""
    @pl.when(pl.program_id(2) == 0)
    def _init():
        acc_ref[...] = jnp.zeros_like(acc_ref)

    acc_ref[...] += jnp.dot(a_ref[...], b_ref[...],
                            preferred_element_type=jnp.float32)

    @pl.when(pl.program_id(2) == pl.num_programs(2) - 1)
    def _finalize():
        out = acc_ref[...] + bias_ref[...] + r_ref[...].astype(jnp.float32)
        o_ref[...] = jnp.maximum(out, 0.0).astype(o_ref.dtype)


def _max_reduce_kernel(x_ref, o_ref):
    """x: (KK, tm, C) window slabs -> o: (tm, C) elementwise max over taps."""
    acc = x_ref[0]
    for t in range(1, x_ref.shape[0]):
        acc = jnp.maximum(acc, x_ref[t])
    o_ref[...] = acc


def _head_kernel(x_ref, w_ref, b_ref, o_ref):
    """Adaptive avg-pool (mean over HW) + Linear + log_softmax (f32)."""
    xf = x_ref[...].astype(jnp.float32)
    pooled = jnp.mean(xf, axis=1)                       # (N, C)
    logits = jnp.dot(pooled.astype(jnp.bfloat16), w_ref[...],
                     preferred_element_type=jnp.float32) + b_ref[...]
    m = jnp.max(logits, axis=-1, keepdims=True)
    lse = jnp.log(jnp.sum(jnp.exp(logits - m), axis=-1, keepdims=True)) + m
    o_ref[...] = logits - lse


# ----------------------------------------------------------------------------
# Kernel wrappers
# ----------------------------------------------------------------------------

def matmul_bias(a, b, bias, relu, residual=None, out_dtype=jnp.bfloat16):
    """a: (M, K) bf16, b: (K, N) bf16, bias: (1, N) f32, residual: (M, N) bf16.

    Tiled over (M, N, K); K is the innermost reduction axis accumulated in an
    f32 VMEM scratch.  Tiles are sized to fit comfortably in every
    generation's scoped VMEM (v7x 64 MiB included).
    """
    M, K = a.shape
    Kb, N = b.shape
    assert K == Kb

    # N (lane) tiling.
    tn = N if N <= 256 else 256
    assert N % tn == 0

    # K (reduction) tiling; prefer an exact divisor to avoid padding.
    if K <= 1024:
        tk, Kp = K, K
    else:
        tk = None
        for cand in (512, 384, 256, 128):
            if K % cand == 0:
                tk = cand
                break
        if tk is None:
            tk = 512
            Kp = _round_up(K, tk)
            a = jnp.pad(a, ((0, 0), (0, Kp - K)))
            b = jnp.pad(b, ((0, Kp - K), (0, 0)))
        else:
            Kp = K

    # M tiling.
    Mp = _round_up(M, 8)
    if Mp <= 512:
        tm = Mp
    else:
        tm = 256
        Mp = _round_up(M, tm)
    if Mp != M:
        a = jnp.pad(a, ((0, Mp - M), (0, 0)))
        if residual is not None:
            residual = jnp.pad(residual, ((0, Mp - M), (0, 0)))

    grid = (Mp // tm, N // tn, Kp // tk)

    in_specs = [
        pl.BlockSpec((tm, tk), lambda i, j, k: (i, k)),
        pl.BlockSpec((tk, tn), lambda i, j, k: (k, j)),
        pl.BlockSpec((1, tn), lambda i, j, k: (0, j)),
    ]
    args = [a, b, bias]
    if residual is not None:
        in_specs.append(pl.BlockSpec((tm, tn), lambda i, j, k: (i, j)))
        args.append(residual)
        kernel = _matmul_bias_res_relu_kernel
    else:
        kernel = functools.partial(_matmul_bias_kernel, relu=relu)

    out = pl.pallas_call(
        kernel,
        out_shape=jax.ShapeDtypeStruct((Mp, N), out_dtype),
        grid=grid,
        in_specs=in_specs,
        out_specs=pl.BlockSpec((tm, tn), lambda i, j, k: (i, j)),
        scratch_shapes=[pltpu.VMEM((tm, tn), jnp.float32)],
        compiler_params=pltpu.CompilerParams(
            dimension_semantics=("parallel", "parallel", "arbitrary")),
    )(*args)
    return out[:M] if Mp != M else out


def head(x_nhwc, w, b, num_classes):
    """Elyx / final head: global avg-pool + Linear + log_softmax.

    Logit lane dim is padded to 128 in the params (lane-dense stores); padded
    classes carry a -1e9 bias so softmax ignores them, then we slice.
    """
    n, h, wd, c = x_nhwc.shape
    xr = x_nhwc.reshape(n, h * wd, c)
    ncp = w.shape[1]
    out = pl.pallas_call(
        _head_kernel,
        out_shape=jax.ShapeDtypeStruct((n, ncp), jnp.float32),
        in_specs=[pl.BlockSpec(memory_space=pltpu.MemorySpace.VMEM)] * 3,
        out_specs=pl.BlockSpec(memory_space=pltpu.MemorySpace.VMEM),
    )(xr, w, b)
    return out[:, :num_classes]


def maxpool_3x3_s2(x):
    """3x3 stride-2 maxpool, pad 1.  Tap-max computed in a Pallas kernel tiled
    over the M = N*Ho*Wo axis."""
    n, h, w, c = x.shape
    k, s, pad = 3, 2, 1
    pad_val = float(jnp.finfo(x.dtype).min)
    xp = jnp.pad(x, ((0, 0), (pad, pad), (pad, pad), (0, 0)),
                 constant_values=pad_val)
    ho = (h + 2 * pad - k) // s + 1
    wo = (w + 2 * pad - k) // s + 1
    m = n * ho * wo
    slabs = [xp[:, i:i + s * ho:s, j:j + s * wo:s, :].reshape(m, c)
             for i in range(k) for j in range(k)]
    stacked = jnp.stack(slabs, axis=0)  # (9, M, C)

    mp = _round_up(m, 8)
    if mp <= 2048:
        tm = mp
    else:
        tm = 512
        mp = _round_up(m, tm)
    if mp != m:
        stacked = jnp.pad(stacked, ((0, 0), (0, mp - m), (0, 0)),
                          constant_values=pad_val)

    out = pl.pallas_call(
        _max_reduce_kernel,
        out_shape=jax.ShapeDtypeStruct((mp, c), x.dtype),
        grid=(mp // tm,),
        in_specs=[pl.BlockSpec((k * k, tm, c), lambda i: (0, i, 0))],
        out_specs=pl.BlockSpec((tm, c), lambda i: (i, 0)),
        compiler_params=pltpu.CompilerParams(
            dimension_semantics=("parallel",)),
    )(stacked)
    if mp != m:
        out = out[:m]
    return out.reshape(n, ho, wo, c)


# ----------------------------------------------------------------------------
# Glue (reshapes / patch extraction) in plain JAX
# ----------------------------------------------------------------------------

def im2col(x, kh, kw, stride, pad):
    """x: (N, H, W, C) -> (N*Ho*Wo, kh*kw*C); row order matches HWIO reshape."""
    n, h, w, c = x.shape
    xp = jnp.pad(x, ((0, 0), (pad, pad), (pad, pad), (0, 0)))
    ho = (h + 2 * pad - kh) // stride + 1
    wo = (w + 2 * pad - kw) // stride + 1
    slabs = []
    for i in range(kh):
        for j in range(kw):
            slabs.append(xp[:, i:i + stride * ho:stride, j:j + stride * wo:stride, :])
    patches = jnp.stack(slabs, axis=3)  # (n, ho, wo, kh*kw, c)
    return patches.reshape(n * ho * wo, kh * kw * c), ho, wo


def conv_block(x, p, stride, pad, relu, residual=None):
    """Conv (bias=False) + folded BN (+ residual) (+ ReLU).  x: (N,H,W,Cin) bf16."""
    kh, kw, cin, cout = p["w_shape"]
    n = x.shape[0]
    if kh == 1 and kw == 1:
        if stride > 1:
            x = x[:, ::stride, ::stride, :]
        _, ho, wo, _ = x.shape
        a = x.reshape(n * ho * wo, cin)
    else:
        a, ho, wo = im2col(x, kh, kw, stride, pad)
    r = None if residual is None else residual.reshape(n * ho * wo, cout)
    out = matmul_bias(a, p["w"], p["bias"], relu=relu, residual=r)
    return out.reshape(n, ho, wo, cout)


def bottleneck(x, p):
    """torchvision Bottleneck (stride on the 3x3 conv, expansion=4).
    The residual add + ReLU is fused into conv3's matmul epilogue."""
    identity = x
    out = conv_block(x, p["conv1"], stride=1, pad=0, relu=True)
    out = conv_block(out, p["conv2"], stride=p["stride"], pad=1, relu=True)
    if "downsample" in p:
        identity = conv_block(x, p["downsample"], stride=p["stride"], pad=0,
                              relu=False)
    out = conv_block(out, p["conv3"], stride=1, pad=0, relu=True,
                     residual=identity)
    return out


# ----------------------------------------------------------------------------
# Deterministic synthetic parameters (ResNet-152 architecture)
# ----------------------------------------------------------------------------

_rng = np.random.default_rng(0)


def _make_conv_bn(kh, kw, cin, cout):
    fan_in = kh * kw * cin
    w = _rng.normal(0.0, np.sqrt(2.0 / fan_in),
                    size=(kh, kw, cin, cout)).astype(np.float32)
    gamma = _rng.uniform(0.2, 0.5, size=(cout,)).astype(np.float32)
    beta = _rng.normal(0.0, 0.01, size=(cout,)).astype(np.float32)
    rmean = _rng.normal(0.0, 0.01, size=(cout,)).astype(np.float32)
    rvar = _rng.uniform(0.5, 1.5, size=(cout,)).astype(np.float32)
    scale = gamma / np.sqrt(rvar + 1e-5)
    bias = beta - rmean * scale
    w_folded = (w * scale).reshape(kh * kw * cin, cout)   # fold BN scale into W
    return {
        "w": jnp.asarray(w_folded, dtype=jnp.bfloat16),
        "bias": jnp.asarray(bias.reshape(1, cout), dtype=jnp.float32),
        "w_shape": (kh, kw, cin, cout),
    }


def _make_bottleneck(inplanes, planes, stride):
    p = {
        "stride": stride,
        "conv1": _make_conv_bn(1, 1, inplanes, planes),
        "conv2": _make_conv_bn(3, 3, planes, planes),
        "conv3": _make_conv_bn(1, 1, planes, planes * 4),
    }
    if stride != 1 or inplanes != planes * 4:
        p["downsample"] = _make_conv_bn(1, 1, inplanes, planes * 4)
    return p


def _make_head_params(cin, num_classes):
    ncp = _round_up(max(num_classes, 1), 128)   # lane-dense logits
    w = _rng.normal(0.0, 0.01, size=(cin, num_classes)).astype(np.float32)
    b = _rng.normal(0.0, 0.01, size=(num_classes,)).astype(np.float32)
    wp = np.zeros((cin, ncp), np.float32)
    wp[:, :num_classes] = w
    bp = np.full((1, ncp), -1e9, np.float32)    # padded classes -> ~zero prob
    bp[0, :num_classes] = b
    return {"w": jnp.asarray(wp, dtype=jnp.bfloat16), "b": jnp.asarray(bp)}


def make_params(num_classes):
    params = {"stem": _make_conv_bn(7, 7, 3, 64)}
    # ResNet-152 stage config: (planes, blocks, stride)
    cfg = [(64, 3, 1), (128, 8, 2), (256, 36, 2), (512, 3, 2)]
    blocks = []
    inplanes = 64
    for planes, nblocks, stride in cfg:
        for bi in range(nblocks):
            blocks.append(_make_bottleneck(inplanes, planes,
                                           stride if bi == 0 else 1))
            inplanes = planes * 4
    params["blocks"] = blocks

    exit_channels = [512] * 8 + [1024] * 36 + [2048] * 3
    params["exits"] = [_make_head_params(c, num_classes) for c in exit_channels]
    params["fc"] = _make_head_params(2048, num_classes)
    params["num_classes"] = num_classes
    return params


# ----------------------------------------------------------------------------
# Forward pass (test=False path of ResNet152Elyx.forward)
# ----------------------------------------------------------------------------

def resnet152_elyx_forward(x_nchw, params):
    num_classes = params["num_classes"]
    x = jnp.transpose(x_nchw, (0, 2, 3, 1)).astype(jnp.bfloat16)  # NCHW -> NHWC

    # begin = conv1 + bn1 + relu + maxpool + layer1
    x = conv_block(x, params["stem"], stride=2, pad=3, relu=True)
    x = maxpool_3x3_s2(x)
    for blk in params["blocks"][:3]:
        x = bottleneck(x, blk)

    # elyx layers: every remaining bottleneck block followed by an exit head
    intermediate_outputs = []
    for blk, ex in zip(params["blocks"][3:], params["exits"]):
        x = bottleneck(x, blk)
        intermediate_outputs.append(head(x, ex["w"], ex["b"], num_classes))

    # final: adaptive avg-pool + fc + log_softmax
    output = head(x, params["fc"]["w"], params["fc"]["b"], num_classes)
    return output, intermediate_outputs


if __name__ == "__main__":
    num_classes = 10
    params = make_params(num_classes)

    key = jax.random.PRNGKey(0)
    x = jax.random.normal(key, (2, 3, 32, 32), dtype=jnp.float32)  # NCHW input

    out, inter = resnet152_elyx_forward(x, params)
    out = jax.block_until_ready(out)
    jax.block_until_ready(inter)

    assert out.shape == (2, num_classes)
    assert len(inter) == 47 and all(y.shape == (2, num_classes) for y in inter)
    # log_softmax rows must exponentiate-sum to 1
    assert np.allclose(np.exp(np.asarray(out)).sum(axis=1), 1.0, atol=1e-4)
    assert np.allclose(np.exp(np.asarray(inter[0])).sum(axis=1), 1.0, atol=1e-4)
    print("KERNEL_OK")
</pallas_src>

<mosaic_0001>
module attributes {stable_mosaic.version = 11 : i64} {
  func.func @_matmul_bias_kernel(%arg0: i32, %arg1: i32, %arg2: i32, %arg3: memref<512x147xbf16, #tpu.memory_space<vmem>>, %arg4: memref<147x64xbf16, #tpu.memory_space<vmem>>, %arg5: memref<1x64xf32, #tpu.memory_space<vmem>>, %arg6: memref<512x64xbf16, #tpu.memory_space<vmem>>, %arg7: memref<512x64xf32, #tpu.memory_space<vmem>>) attributes {dimension_semantics = [#tpu.dimension_semantics<parallel>, #tpu.dimension_semantics<parallel>, #tpu.dimension_semantics<arbitrary>], iteration_bounds = array<i64: 1, 1, 1>, scalar_prefetch = 0 : i64, scratch_operands = 1 : i64, tpu.core_type = #tpu.core_type<tc>, window_params = [{transform_indices = @transform_0, window_bounds = array<i64: 512, 147>}, {transform_indices = @transform_1, window_bounds = array<i64: 147, 64>}, {transform_indices = @transform_2, window_bounds = array<i64: 1, 64>}, {transform_indices = @transform_3, window_bounds = array<i64: 512, 64>}]} {
    %c0_i32 = arith.constant 0 : i32
    %0 = arith.cmpi eq, %arg2, %c0_i32 : i32
    %1 = arith.extui %0 : i1 to i32
    %c0_i32_0 = arith.constant 0 : i32
    %2 = arith.cmpi ne, %1, %c0_i32_0 : i32
    scf.if %2 {
      %cst_10 = arith.constant 0.000000e+00 : f32
      %12 = vector.broadcast %cst_10 : f32 to vector<512x64xf32>
      %c0_11 = arith.constant 0 : index
      %c0_12 = arith.constant 0 : index
      %13 = vector.load %arg7[%c0_11, %c0_12] : memref<512x64xf32, #tpu.memory_space<vmem>>, vector<512x64xf32>
      tpu.vector_store %arg7[%c0_11, %c0_12], %12 {strides = array<i32>} : memref<512x64xf32, #tpu.memory_space<vmem>>, vector<512x64xf32>,
    } else {
    }
    %c0 = arith.constant 0 : index
    %c0_1 = arith.constant 0 : index
    %3 = vector.load %arg7[%c0, %c0_1] : memref<512x64xf32, #tpu.memory_space<vmem>>, vector<512x64xf32>
    %c0_2 = arith.constant 0 : index
    %c0_3 = arith.constant 0 : index
    %4 = vector.load %arg3[%c0_2, %c0_3] : memref<512x147xbf16, #tpu.memory_space<vmem>>, vector<512x147xbf16>
    %c0_4 = arith.constant 0 : index
    %c0_5 = arith.constant 0 : index
    %5 = vector.load %arg4[%c0_4, %c0_5] : memref<147x64xbf16, #tpu.memory_space<vmem>>, vector<147x64xbf16>
    %cst = arith.constant dense<0.000000e+00> : vector<512x64xf32>
    %6 = tpu.matmul %4, %5, %cst {dimension_numbers = #tpu.dot_dimension_numbers<[1], [0], [0], [1], [0, 0, 1, 1], [], []>} : vector<512x147xbf16>, vector<147x64xbf16>, vector<512x64xf32> -> vector<512x64xf32>
    %7 = arith.addf %3, %6 : vector<512x64xf32>
    %c0_6 = arith.constant 0 : index
    %c0_7 = arith.constant 0 : index
    %8 = vector.load %arg7[%c0_6, %c0_7] : memref<512x64xf32, #tpu.memory_space<vmem>>, vector<512x64xf32>
    tpu.vector_store %arg7[%c0_6, %c0_7], %7 {strides = array<i32>} : memref<512x64xf32, #tpu.memory_space<vmem>>, vector<512x64xf32>,
    %c0_i32_8 = arith.constant 0 : i32
    %9 = arith.cmpi eq, %arg2, %c0_i32_8 : i32
    %10 = arith.extui %9 : i1 to i32
    %c0_i32_9 = arith.constant 0 : i32
    %11 = arith.cmpi ne, %10, %c0_i32_9 : i32
    scf.if %11 {
      %c0_10 = arith.constant 0 : index
      %c0_11 = arith.constant 0 : index
      %12 = vector.load %arg7[%c0_10, %c0_11] : memref<512x64xf32, #tpu.memory_space<vmem>>, vector<512x64xf32>
      %c0_12 = arith.constant 0 : index
      %c0_13 = arith.constant 0 : index
      %13 = vector.load %arg5[%c0_12, %c0_13] : memref<1x64xf32, #tpu.memory_space<vmem>>, vector<1x64xf32>
      %14 = vector.broadcast %13 : vector<1x64xf32> to vector<512x64xf32>
      %15 = arith.addf %12, %14 : vector<512x64xf32>
      %cst_14 = arith.constant 0.000000e+00 : f32
      %16 = vector.broadcast %cst_14 : f32 to vector<512x64xf32>
      %17 = arith.maximumf %15, %16 : vector<512x64xf32>
      %18 = arith.truncf %17 : vector<512x64xf32> to vector<512x64xbf16>
      %c0_15 = arith.constant 0 : index
      %c0_16 = arith.constant 0 : index
      %19 = vector.load %arg6[%c0_15, %c0_16] : memref<512x64xbf16, #tpu.memory_space<vmem>>, vector<512x64xbf16>
      tpu.vector_store %arg6[%c0_15, %c0_16], %18 {strides = array<i32>} : memref<512x64xbf16, #tpu.memory_space<vmem>>, vector<512x64xbf16>,
    } else {
    }
    return
  }
  func.func @transform_0(%arg0: i32, %arg1: i32, %arg2: i32) -> (i32, i32) {
    %c0_i32 = arith.constant 0 : i32
    return %arg0, %arg2 : i32, i32
  }
  func.func @transform_1(%arg0: i32, %arg1: i32, %arg2: i32) -> (i32, i32) {
    %c0_i32 = arith.constant 0 : i32
    return %arg2, %arg1 : i32, i32
  }
  func.func @transform_2(%arg0: i32, %arg1: i32, %arg2: i32) -> (i32, i32) {
    %c0_i32 = arith.constant 0 : i32
    %c0_i32_0 = arith.constant 0 : i32
    return %c0_i32, %arg1 : i32, i32
  }
  func.func @transform_3(%arg0: i32, %arg1: i32, %arg2: i32) -> (i32, i32) {
    %c0_i32 = arith.constant 0 : i32
    return %arg0, %arg1 : i32, i32
  }
}

</mosaic_0001>

<bundles_post_ra>
// kernel: tpu_custom_call.1
= control target key start
LH: loop header
LB: loop body
LE: loop exit
PB: predicated region body
PF: predicated region fallthrough
CT: control target
= control target key end

     0   :  { %vm673_vm0 = vcmask 1040384   ;;  %vm674_vm1 = vcmask 1041408   ;;  %v1890_v2 = vmov 65535   ;;  %vm576_vm2 = vcmask 154624   ;;  %s2985_s1 = inlined_call_operand.vmem [shape: bf16[147,64], index: 1, kind: input, shape index: {}]   ;;  %s2986_s0 = inlined_call_operand.vmem [shape: bf16[512,147], index: 0, kind: input, shape index: {}]   ;;  %s2987_s2 = inlined_call_operand.vmem [shape: f32[1,64], index: 2, kind: input, shape index: {}]   ;;  %s2988_s3 = inlined_call_operand.vmem [shape: bf16[512,64], index: 3, kind: output, shape index: {}]  }
   0x1   :  { %v1874_v0 = vld [vmem:[%s2985_s1 + $0x38] sm:$0xff]  ;;  %v230_v1 = vld [vmem:[%s2985_s1 + $0x48] sm:$0x3]  ;;  %v675_v3 = vsel %vm673_vm0, 4294967295, %v1890_v2  ;;  %v1873_v5 = vld [vmem:[%s2985_s1 + $0x30] sm:$0xff]  ;;  %vm19_vm3 = vcmask 523264  }
   0x2   :  { %v556_v4 = vunpack.c.l.b16 %v230_v1  ;;  %680 = vmatpush.bf16.msra.mxu0 %v1874_v0  ;;  %1876 = vmatpush.bf16.msra.mxu2 %v1874_v0  ;;  %v676_v6 = vsel %vm674_vm1, %v675_v3, 0  ;;  %v1872_v9 = vld [vmem:[%s2985_s1 + $0x28] sm:$0xff]  ;;  %v1875_v10 = vld [vmem:[%s2985_s1 + $0x40] sm:$0xff]  ;;  %v1837_v13 = vld [vmem:[%s2986_s0 + $0x114] sm:$0xf]  ;;  %vm1410_vm4 = vcmask 519168  }
   0x3   :  { %v1803_v11 = vld [vmem:[%s2986_s0 + $0x4] sm:$0xf]  ;;  %v1483_v12 = vld [vmem:[%s2986_s0 + $0x8] sm:$0xf0]  ;;  %v1619_v14 = vld [vmem:[%s2986_s0 + $0x118] sm:$0xf0] }
   0x4   :  { %v566_v7 = vpack.c.b16 %v556_v4, %v556_v4  ;;  %v1486_v15 = vor.u32 %v1803_v11, %v1483_v12  ;;  %v1871_v16 = vld [vmem:[%s2985_s1 + $0x20] sm:$0xff]  ;;  %v1622_v17 = vor.u32 %v1837_v13, %v1619_v14  ;;  %v1870_v18 = vld [vmem:[%s2985_s1 + $0x18] sm:$0xff]  ;;  %v1869_v19 = vld [vmem:[%s2985_s1 + $0x10] sm:$0xff] }
   0x5   :  { %v1868_v20 = vld [vmem:[%s2985_s1 + $0x8] sm:$0xff]  ;;  %v1805_v21 = vld [vmem:[%s2986_s0 + $0x14] sm:$0xf]  ;;  %v1491_v22 = vld [vmem:[%s2986_s0 + $0x18] sm:$0xf0] }
   0x6   :  { %v678_v8 = vand.u32 %v676_v6, %v566_v7  ;;  %681 = vmatpush.bf16.msra.mxu0 %v1873_v5  ;;  %1877 = vmatpush.bf16.msra.mxu2 %v1873_v5  ;;  %v1839_v23 = vld [vmem:[%s2986_s0 + $0x124] sm:$0xf]  ;;  %v1627_v24 = vld [vmem:[%s2986_s0 + $0x128] sm:$0xf0]  ;;  %v1494_v25 = vor.u32 %v1805_v21, %v1491_v22  ;;  %v1481_v27 = vld [vmem:[%s2986_s0] sm:$0xf] }
   0x7   :  { %v1867_v26 = vld [vmem:[%s2985_s1] sm:$0xff]  ;;  %v1804_v28 = vld [vmem:[%s2986_s0 + $0x4] sm:$0xf0]  ;;  %v1630_v31 = vor.u32 %v1839_v23, %v1627_v24  ;;  %v1499_v35 = vld [vmem:[%s2986_s0 + $0x28] sm:$0xf0] }
   0x8   :  { %855 = vmatpush.bf16.msra.mxu1 %v678_v8  ;;  %1884 = vmatpush.bf16.msra.mxu3 %v678_v8  ;;  %v1609_v29 = vld [vmem:[%s2986_s0 + $0x100] sm:$0xf]  ;;  %v1836_v30 = vld [vmem:[%s2986_s0 + $0x104] sm:$0xf0]  ;;  %v1482_v32 = vor.u32 %v1804_v28, %v1481_v27  ;;  %v1807_v34 = vld [vmem:[%s2986_s0 + $0x24] sm:$0xf] }
   0x9   :  { %v1610_v33 = vor.u32 %v1836_v30, %v1609_v29  ;;  %v1841_v36 = vld [vmem:[%s2986_s0 + $0x134] sm:$0xf]  ;;  %v1635_v37 = vld [vmem:[%s2986_s0 + $0x138] sm:$0xf0]  ;;  %v1502_v38 = vor.u32 %v1807_v34, %v1499_v35  ;;  %v1489_v39 = vld [vmem:[%s2986_s0 + $0x10] sm:$0xf] }
   0xa   :  { %682 = vmatpush.bf16.msra.mxu0 %v1872_v9  ;;  %1878 = vmatpush.bf16.msra.mxu2 %v1872_v9  ;;  %v1806_v40 = vld [vmem:[%s2986_s0 + $0x14] sm:$0xf0]  ;;  %v1617_v41 = vld [vmem:[%s2986_s0 + $0x110] sm:$0xf]  ;;  %v1638_v43 = vor.u32 %v1841_v36, %v1635_v37  ;;  %v1809_v46 = vld [vmem:[%s2986_s0 + $0x34] sm:$0xf] }
   0xb   :  { %v1838_v42 = vld [vmem:[%s2986_s0 + $0x114] sm:$0xf0]  ;;  %v1490_v44 = vor.u32 %v1806_v40, %v1489_v39  ;;  %v1507_v47 = vld [vmem:[%s2986_s0 + $0x38] sm:$0xf0]  ;;  %v1843_v48 = vld [vmem:[%s2986_s0 + $0x144] sm:$0xf] }
   0xc   :  { %856 = vmatpush.bf16.msra.mxu1 %v1875_v10  ;;  %1885 = vmatpush.bf16.msra.mxu3 %v1875_v10  ;;  %v1618_v45 = vor.u32 %v1838_v42, %v1617_v41  ;;  %v1643_v49 = vld [vmem:[%s2986_s0 + $0x148] sm:$0xf0]  ;;  %v1510_v50 = vor.u32 %v1809_v46, %v1507_v47  ;;  %v1497_v51 = vld [vmem:[%s2986_s0 + $0x20] sm:$0xf]  ;;  %v1808_v52 = vld [vmem:[%s2986_s0 + $0x24] sm:$0xf0] }
   0xd   :  { %v1625_v53 = vld [vmem:[%s2986_s0 + $0x120] sm:$0xf]  ;;  %v1840_v54 = vld [vmem:[%s2986_s0 + $0x124] sm:$0xf0]  ;;  %v1646_v55 = vor.u32 %v1843_v48, %v1643_v49  ;;  %v1498_v56 = vor.u32 %v1808_v52, %v1497_v51  ;;  %v1811_v58 = vld [vmem:[%s2986_s0 + $0x44] sm:$0xf] }
   0xe   :  { %683 = vmatpush.bf16.msra.mxu0 %v1871_v16  ;;  %1879 = vmatpush.bf16.msra.mxu2 %v1871_v16  ;;  %v1626_v57 = vor.u32 %v1840_v54, %v1625_v53  ;;  %v1515_v59 = vld [vmem:[%s2986_s0 + $0x48] sm:$0xf0]  ;;  %v1845_v60 = vld [vmem:[%s2986_s0 + $0x154] sm:$0xf]  ;;  %v1651_v61 = vld [vmem:[%s2986_s0 + $0x158] sm:$0xf0] }
   0xf   :  { %1771 = vmatmul.msk.bf16.vlgmr.msra.gmra.mxu1 %vm576_vm2, %v1486_v15  ;;  %1788 = vmatmul.msk.bf16.vlgmr.msra.gmra.mxu3 %vm576_vm2, %v1622_v17  ;;  %v1518_v62 = vor.u32 %v1811_v58, %v1515_v59  ;;  %v1505_v63 = vld [vmem:[%s2986_s0 + $0x30] sm:$0xf]  ;;  %v1810_v0 = vld [vmem:[%s2986_s0 + $0x34] sm:$0xf0]  ;;  %v1654_v3 = vor.u32 %v1845_v60, %v1651_v61  ;;  %v1813_v6 = vld [vmem:[%s2986_s0 + $0x54] sm:$0xf] }
  0x10   :  { %v1633_v1 = vld [vmem:[%s2986_s0 + $0x130] sm:$0xf]  ;;  %v1842_v2 = vld [vmem:[%s2986_s0 + $0x134] sm:$0xf0]  ;;  %v1506_v4 = vor.u32 %v1810_v0, %v1505_v63  ;;  %v1523_v7 = vld [vmem:[%s2986_s0 + $0x58] sm:$0xf0] }
  0x11   :  { %v1634_v5 = vor.u32 %v1842_v2, %v1633_v1  ;;  %v1847_v8 = vld [vmem:[%s2986_s0 + $0x164] sm:$0xf]  ;;  %v1659_v9 = vld [vmem:[%s2986_s0 + $0x168] sm:$0xf0]  ;;  %v1526_v10 = vor.u32 %v1813_v6, %v1523_v7  ;;  %v1513_v11 = vld [vmem:[%s2986_s0 + $0x40] sm:$0xf] }
  0x12   :  { %684 = vmatpush.bf16.msra.mxu0 %v1870_v18  ;;  %1880 = vmatpush.bf16.msra.mxu2 %v1870_v18  ;;  %v1812_v12 = vld [vmem:[%s2986_s0 + $0x44] sm:$0xf0]  ;;  %v1641_v13 = vld [vmem:[%s2986_s0 + $0x140] sm:$0xf]  ;;  %v1662_v15 = vor.u32 %v1847_v8, %v1659_v9  ;;  %v1815_v18 = vld [vmem:[%s2986_s0 + $0x64] sm:$0xf] }
  0x13   :  { %v1844_v14 = vld [vmem:[%s2986_s0 + $0x144] sm:$0xf0]  ;;  %v1514_v16 = vor.u32 %v1812_v12, %v1513_v11  ;;  %v1667_v21 = vld [vmem:[%s2986_s0 + $0x178] sm:$0xf0]  ;;  %v1521_v23 = vld [vmem:[%s2986_s0 + $0x50] sm:$0xf] }
  0x14   :  { %v1642_v17 = vor.u32 %v1844_v14, %v1641_v13  ;;  %v1814_v24 = vld [vmem:[%s2986_s0 + $0x54] sm:$0xf0]  ;;  %v1817_v30 = vld [vmem:[%s2986_s0 + $0x74] sm:$0xf]  ;;  %v1529_v35 = vld [vmem:[%s2986_s0 + $0x60] sm:$0xf] }
  0x15   :  { %v1522_v28 = vor.u32 %v1814_v24, %v1521_v23  ;;  %v1816_v36 = vld [vmem:[%s2986_s0 + $0x64] sm:$0xf0]  ;;  %v1891_v37 = vmov 0.0   ;;  %v1537_v46 = vld [vmem:[%s2986_s0 + $0x70] sm:$0xf] }
  0x16   :  { %685 = vmatpush.bf16.msra.mxu0 %v1869_v19  ;;  %1881 = vmatpush.bf16.msra.mxu2 %v1869_v19  ;;  %v1531_v19 = vld [vmem:[%s2986_s0 + $0x68] sm:$0xf0]  ;;  %20 = vst.msk [vmem:[#allocation2] sm:$0xff] %vm19_vm3, %v1891_v37  ;;  %v1848_v39 = vld [vmem:[%s2986_s0 + $0x164] sm:$0xf0]  ;;  %v1530_v41 = vor.u32 %v1816_v36, %v1529_v35 }
  0x17   :  { %v1534_v22 = vor.u32 %v1815_v18, %v1531_v19  ;;  %21 = vst.msk [vmem:[#allocation2 + $0x8] sm:$0xff] %vm19_vm3, %v1891_v37  ;;  %v1818_v47 = vld [vmem:[%s2986_s0 + $0x74] sm:$0xf0]  ;;  %v1665_v49 = vld [vmem:[%s2986_s0 + $0x170] sm:$0xf] }
  0x18   :  { %22 = vst.msk [vmem:[#allocation2 + $0x10] sm:$0xff] %vm19_vm3, %v1891_v37  ;;  %v1538_v51 = vor.u32 %v1818_v47, %v1537_v46  ;;  %v1821_v54 = vld [vmem:[%s2986_s0 + $0x94] sm:$0xf]  ;;  %v1545_v60 = vld [vmem:[%s2986_s0 + $0x80] sm:$0xf] }
  0x19   :  { %23 = vst.msk [vmem:[#allocation2 + $0x18] sm:$0xff] %vm19_vm3, %v1891_v37  ;;  %v1820_v61 = vld [vmem:[%s2986_s0 + $0x84] sm:$0xf0]  ;;  %v1673_v63 = vld [vmem:[%s2986_s0 + $0x180] sm:$0xf] }
  0x1a   :  { %686 = vmatpush.bf16.msra.mxu0 %v1868_v20  ;;  %1882 = vmatpush.bf16.msra.mxu2 %v1868_v20  ;;  %v1849_v20 = vld [vmem:[%s2986_s0 + $0x174] sm:$0xf]  ;;  %24 = vst.msk [vmem:[#allocation2 + $0x20] sm:$0xff] %vm19_vm3, %v1891_v37  ;;  %v1852_v0 = vld [vmem:[%s2986_s0 + $0x184] sm:$0xf0]  ;;  %v1546_v1 = vor.u32 %v1820_v61, %v1545_v60 }
  0x1b   :  { %v1670_v27 = vor.u32 %v1849_v20, %v1667_v21  ;;  %25 = vst.msk [vmem:[#allocation2 + $0x28] sm:$0xff] %vm19_vm3, %v1891_v37  ;;  %v2279_v9 = vld [vmem:[%s2987_s2] ss:$0 sm:$0xff]  ;;  %v1823_v13 = vld [vmem:[%s2986_s0 + $0xa4] sm:$0xf] }
  0x1c   :  { %26 = vst.msk [vmem:[#allocation2 + $0x30] sm:$0xff] %vm19_vm3, %v1891_v37  ;;  %v1563_v14 = vld [vmem:[%s2986_s0 + $0xa8] sm:$0xf0]  ;;  %v1553_v20 = vld [vmem:[%s2986_s0 + $0x90] sm:$0xf] }
  0x1d   :  { %27 = vst.msk [vmem:[#allocation2 + $0x38] sm:$0xff] %vm19_vm3, %v1891_v37  ;;  %v1566_v19 = vor.u32 %v1823_v13, %v1563_v14  ;;  %v1822_v21 = vld [vmem:[%s2986_s0 + $0x94] sm:$0xf0]  ;;  %v1681_v24 = vld [vmem:[%s2986_s0 + $0x190] sm:$0xf] }
  0x1e   :  { %687 = vmatpush.bf16.msra.mxu0 %v1867_v26  ;;  %1883 = vmatpush.bf16.msra.mxu2 %v1867_v26  ;;  %v1846_v26 = vld [vmem:[%s2986_s0 + $0x154] sm:$0xf0]  ;;  %28 = vst.msk [vmem:[#allocation2 + $0x40] sm:$0xff] %vm19_vm3, %v1891_v37  ;;  %v85_v35 = vld [vmem:[#allocation2 + $0x8] sm:$0xff]  ;;  %v1857_v47 = vld [vmem:[%s2986_s0 + $0x1b4] sm:$0xf] }
  0x1f   :  { %1772 = vmatmul.msk.bf16.gmra.mxu1 %vm576_vm2, %v1494_v25  ;;  %1789 = vmatmul.msk.bf16.gmra.mxu3 %vm576_vm2, %v1630_v31  ;;  %v1649_v25 = vld [vmem:[%s2986_s0 + $0x150] sm:$0xf]  ;;  %v1539_v31 = vld [vmem:[%s2986_s0 + $0x78] sm:$0xf0]  ;;  %29 = vst.msk [vmem:[#allocation2 + $0x48] sm:$0xff] %vm19_vm3, %v1891_v37 }
  0x20   :  { %v1650_v29 = vor.u32 %v1846_v26, %v1649_v25  ;;  %v1542_v34 = vor.u32 %v1817_v30, %v1539_v31  ;;  %30 = vst.msk [vmem:[#allocation2 + $0x50] sm:$0xff] %vm19_vm3, %v1891_v37  ;;  %v1854_v25 = vld [vmem:[%s2986_s0 + $0x194] sm:$0xf0]  ;;  %v1856_v60 = vld [vmem:[%s2986_s0 + $0x1a4] sm:$0xf0] }
  0x21   :  { %688 = vmatmul.bf16.vlgmr.msra.gmra.mxu0 %v1482_v32  ;;  %768 = vmatmul.bf16.vlgmr.msra.gmra.mxu2 %v1610_v33  ;;  %v1851_v32 = vld [vmem:[%s2986_s0 + $0x184] sm:$0xf]  ;;  %v1675_v33 = vld [vmem:[%s2986_s0 + $0x188] sm:$0xf0]  ;;  %31 = vst.msk [vmem:[#allocation2 + $0x58] sm:$0xff] %vm19_vm3, %v1891_v37  ;;  %v1682_v31 = vor.u32 %v1854_v25, %v1681_v24 }
  0x22   :  { %v1678_v40 = vor.u32 %v1851_v32, %v1675_v33  ;;  %32 = vst.msk [vmem:[#allocation2 + $0x60] sm:$0xff] %vm19_vm3, %v1891_v37 }
  0x23   :  { %33 = vst.msk [vmem:[#allocation2 + $0x68] sm:$0xff] %vm19_vm3, %v1891_v37 }
  0x24   :  { %34 = vst.msk [vmem:[#allocation2 + $0x70] sm:$0xff] %vm19_vm3, %v1891_v37 }
  0x25   :  { %35 = vst.msk [vmem:[#allocation2 + $0x78] sm:$0xff] %vm19_vm3, %v1891_v37 }
  0x26   :  { %36 = vst.msk [vmem:[#allocation2 + $0x80] sm:$0xff] %vm19_vm3, %v1891_v37 }
  0x27   :  { %37 = vst.msk [vmem:[#allocation2 + $0x88] sm:$0xff] %vm19_vm3, %v1891_v37 }
  0x28   :  { %38 = vst.msk [vmem:[#allocation2 + $0x90] sm:$0xff] %vm19_vm3, %v1891_v37 }
  0x29   :  { %39 = vst.msk [vmem:[#allocation2 + $0x98] sm:$0xff] %vm19_vm3, %v1891_v37 }
  0x2a   :  { %40 = vst.msk [vmem:[#allocation2 + $0xa0] sm:$0xff] %vm19_vm3, %v1891_v37 }
  0x2b   :  { %41 = vst.msk [vmem:[#allocation2 + $0xa8] sm:$0xff] %vm19_vm3, %v1891_v37 }
  0x2c   :  { %42 = vst.msk [vmem:[#allocation2 + $0xb0] sm:$0xff] %vm19_vm3, %v1891_v37 }
  0x2d   :  { %43 = vst.msk [vmem:[#allocation2 + $0xb8] sm:$0xff] %vm19_vm3, %v1891_v37 }
  0x2e   :  { %44 = vst.msk [vmem:[#allocation2 + $0xc0] sm:$0xff] %vm19_vm3, %v1891_v37 }
  0x2f   :  { %1773 = vmatmul.msk.bf16.gmra.mxu1 %vm576_vm2, %v1502_v38  ;;  %1790 = vmatmul.msk.bf16.gmra.mxu3 %vm576_vm2, %v1638_v43  ;;  %v1657_v38 = vld [vmem:[%s2986_s0 + $0x160] sm:$0xf]  ;;  %v1819_v43 = vld [vmem:[%s2986_s0 + $0x84] sm:$0xf]  ;;  %45 = vst.msk [vmem:[#allocation2 + $0xc8] sm:$0xff] %vm19_vm3, %v1891_v37 }
  0x30   :  { %v1658_v42 = vor.u32 %v1848_v39, %v1657_v38  ;;  %46 = vst.msk [vmem:[#allocation2 + $0xd0] sm:$0xff] %vm19_vm3, %v1891_v37 }
  0x31   :  { %693 = vmatmul.bf16.gmra.mxu0 %v1490_v44  ;;  %773 = vmatmul.bf16.gmra.mxu2 %v1618_v45  ;;  %v1547_v44 = vld [vmem:[%s2986_s0 + $0x88] sm:$0xf0]  ;;  %47 = vst.msk [vmem:[#allocation2 + $0xd8] sm:$0xff] %vm19_vm3, %v1891_v37 }
  0x32   :  { %v1550_v45 = vor.u32 %v1819_v43, %v1547_v44  ;;  %48 = vst.msk [vmem:[#allocation2 + $0xe0] sm:$0xff] %vm19_vm3, %v1891_v37  ;;  %v1825_v43 = vld [vmem:[%s2986_s0 + $0xb4] sm:$0xf]  ;;  %v1571_v44 = vld [vmem:[%s2986_s0 + $0xb8] sm:$0xf0] }
  0x33   :  { %49 = vst.msk [vmem:[#allocation2 + $0xe8] sm:$0xff] %vm19_vm3, %v1891_v37 }
  0x34   :  { %50 = vst.msk [vmem:[#allocation2 + $0xf0] sm:$0xff] %vm19_vm3, %v1891_v37 }
  0x35   :  { %51 = vst.msk [vmem:[#allocation2 + $0xf8] sm:$0xff] %vm19_vm3, %v1891_v37 }
  0x36   :  { %52 = vst.msk [vmem:[#allocation2 + $0x100] sm:$0xff] %vm19_vm3, %v1891_v37 }
  0x37   :  { %53 = vst.msk [vmem:[#allocation2 + $0x108] sm:$0xff] %vm19_vm3, %v1891_v37 }
  0x38   :  { %54 = vst.msk [vmem:[#allocation2 + $0x110] sm:$0xff] %vm19_vm3, %v1891_v37 }
  0x39   :  { %55 = vst.msk [vmem:[#allocation2 + $0x118] sm:$0xff] %vm19_vm3, %v1891_v37 }
  0x3a   :  { %56 = vst.msk [vmem:[#allocation2 + $0x120] sm:$0xff] %vm19_vm3, %v1891_v37 }
  0x3b   :  { %57 = vst.msk [vmem:[#allocation2 + $0x128] sm:$0xff] %vm19_vm3, %v1891_v37 }
  0x3c   :  { %58 = vst.msk [vmem:[#allocation2 + $0x130] sm:$0xff] %vm19_vm3, %v1891_v37 }
  0x3d   :  { %59 = vst.msk [vmem:[#allocation2 + $0x138] sm:$0xff] %vm19_vm3, %v1891_v37 }
  0x3e   :  { %60 = vst.msk [vmem:[#allocation2 + $0x140] sm:$0xff] %vm19_vm3, %v1891_v37 }
  0x3f   :  { %1774 = vmatmul.msk.bf16.gmra.mxu1 %vm576_vm2, %v1510_v50  ;;  %1791 = vmatmul.msk.bf16.gmra.mxu3 %vm576_vm2, %v1646_v55  ;;  %v1850_v50 = vld [vmem:[%s2986_s0 + $0x174] sm:$0xf0]  ;;  %v1555_v55 = vld [vmem:[%s2986_s0 + $0x98] sm:$0xf0]  ;;  %61 = vst.msk [vmem:[#allocation2 + $0x148] sm:$0xff] %vm19_vm3, %v1891_v37 }
  0x40   :  { %v1666_v52 = vor.u32 %v1850_v50, %v1665_v49  ;;  %v1558_v59 = vor.u32 %v1821_v54, %v1555_v55  ;;  %62 = vst.msk [vmem:[#allocation2 + $0x150] sm:$0xff] %vm19_vm3, %v1891_v37  ;;  %v87_v50 = vld [vmem:[#allocation2 + $0x18] sm:$0xff]  ;;  %v1574_v54 = vor.u32 %v1825_v43, %v1571_v44  ;;  %v1561_v55 = vld [vmem:[%s2986_s0 + $0xa0] sm:$0xf] }
  0x41   :  { %698 = vmatmul.bf16.gmra.mxu0 %v1498_v56  ;;  %778 = vmatmul.bf16.gmra.mxu2 %v1626_v57  ;;  %v1853_v56 = vld [vmem:[%s2986_s0 + $0x194] sm:$0xf]  ;;  %v1683_v57 = vld [vmem:[%s2986_s0 + $0x198] sm:$0xf0]  ;;  %63 = vst.msk [vmem:[#allocation2 + $0x158] sm:$0xff] %vm19_vm3, %v1891_v37 }
  0x42   :  { %v1686_v58 = vor.u32 %v1853_v56, %v1683_v57  ;;  %64 = vst.msk [vmem:[#allocation2 + $0x160] sm:$0xff] %vm19_vm3, %v1891_v37  ;;  %v1824_v56 = vld [vmem:[%s2986_s0 + $0xa4] sm:$0xf0]  ;;  %v119_v61 = vld [vmem:[#allocation2 + $0x118] sm:$0xff] }
  0x43   :  { %65 = vst.msk [vmem:[#allocation2 + $0x168] sm:$0xff] %vm19_vm3, %v1891_v37 }
  0x44   :  { %66 = vst.msk [vmem:[#allocation2 + $0x170] sm:$0xff] %vm19_vm3, %v1891_v37 }
  0x45   :  { %67 = vst.msk [vmem:[#allocation2 + $0x178] sm:$0xff] %vm19_vm3, %v1891_v37 }
  0x46   :  { %68 = vst.msk [vmem:[#allocation2 + $0x180] sm:$0xff] %vm19_vm3, %v1891_v37 }
  0x47   :  { %69 = vst.msk [vmem:[#allocation2 + $0x188] sm:$0xff] %vm19_vm3, %v1891_v37 }
  0x48   :  { %70 = vst.msk [vmem:[#allocation2 + $0x190] sm:$0xff] %vm19_vm3, %v1891_v37 }
  0x49   :  { %71 = vst.msk [vmem:[#allocation2 + $0x198] sm:$0xff] %vm19_vm3, %v1891_v37 }
  0x4a   :  { %72 = vst.msk [vmem:[#allocation2 + $0x1a0] sm:$0xff] %vm19_vm3, %v1891_v37 }
  0x4b   :  { %73 = vst.msk [vmem:[#allocation2 + $0x1a8] sm:$0xff] %vm19_vm3, %v1891_v37 }
  0x4c   :  { %74 = vst.msk [vmem:[#allocation2 + $0x1b0] sm:$0xff] %vm19_vm3, %v1891_v37 }
  0x4d   :  { %75 = vst.msk [vmem:[#allocation2 + $0x1b8] sm:$0xff] %vm19_vm3, %v1891_v37 }
  0x4e   :  { %76 = vst.msk [vmem:[#allocation2 + $0x1c0] sm:$0xff] %vm19_vm3, %v1891_v37 }
  0x4f   :  { %1775 = vmatmul.msk.bf16.gmra.mxu1 %vm576_vm2, %v1518_v62  ;;  %1792 = vmatmul.msk.bf16.gmra.mxu3 %vm576_vm2, %v1654_v3  ;;  %v84_v3 = vld [vmem:[#allocation2] sm:$0xff]  ;;  %77 = vst.msk [vmem:[#allocation2 + $0x1c8] sm:$0xff] %vm19_vm3, %v1891_v37 }
  0x50   :  { %78 = vst.msk [vmem:[#allocation2 + $0x1d0] sm:$0xff] %vm19_vm3, %v1891_v37 }
  0x51   :  { %703 = vmatmul.bf16.gmra.mxu0 %v1506_v4  ;;  %783 = vmatmul.bf16.gmra.mxu2 %v1634_v5  ;;  %v1674_v5 = vor.u32 %v1852_v0, %v1673_v63  ;;  %79 = vst.msk [vmem:[#allocation2 + $0x1d8] sm:$0xff] %vm19_vm3, %v1891_v37  ;;  %v1562_v63 = vor.u32 %v1824_v56, %v1561_v55  ;;  %v121_v55 = vld [vmem:[#allocation2 + $0x128] sm:$0xff] }
  0x52   :  { %80 = vst.msk [vmem:[#allocation2 + $0x1e0] sm:$0xff] %vm19_vm3, %v1891_v37 }
  0x53   :  { %81 = vst.msk [vmem:[#allocation2 + $0x1e8] sm:$0xff] %vm19_vm3, %v1891_v37 }
  0x54   :  { %82 = vst.msk [vmem:[#allocation2 + $0x1f0] sm:$0xff] %vm19_vm3, %v1891_v37 }
  0x55   :  { %83 = vst.msk [vmem:[#allocation2 + $0x1f8] sm:$0xff] %vm19_vm3, %v1891_v37 }
  0x5f   :  { %1776 = vmatmul.msk.bf16.gmra.mxu1 %vm576_vm2, %v1526_v10  ;;  %1793 = vmatmul.msk.bf16.gmra.mxu3 %vm576_vm2, %v1662_v15  ;;  %v1855_v15 = vld [vmem:[%s2986_s0 + $0x1a4] sm:$0xf] }
  0x61   :  { %708 = vmatmul.bf16.gmra.mxu0 %v1514_v16  ;;  %788 = vmatmul.bf16.gmra.mxu2 %v1642_v17  ;;  %v1691_v16 = vld [vmem:[%s2986_s0 + $0x1a8] sm:$0xf0] }
  0x62   :  { %v1694_v17 = vor.u32 %v1855_v15, %v1691_v16 }
  0x6f   :  { %1777 = vmatmul.msk.bf16.gmra.mxu1 %vm576_vm2, %v1534_v22  ;;  %1794 = vmatmul.msk.bf16.gmra.mxu3 %vm576_vm2, %v1670_v27 }
  0x71   :  { %713 = vmatmul.bf16.gmra.mxu0 %v1522_v28  ;;  %793 = vmatmul.bf16.gmra.mxu2 %v1650_v29  ;;  %v1554_v28 = vor.u32 %v1822_v21, %v1553_v20 }
  0x7f   :  { %1778 = vmatmul.msk.bf16.gmra.mxu1 %vm576_vm2, %v1542_v34  ;;  %1795 = vmatmul.msk.bf16.gmra.mxu3 %vm576_vm2, %v1678_v40  ;;  %v86_v40 = vld [vmem:[#allocation2 + $0x10] sm:$0xff] }
  0x81   :  { %718 = vmatmul.bf16.gmra.mxu0 %v1530_v41  ;;  %798 = vmatmul.bf16.gmra.mxu2 %v1658_v42 }
  0x8c   :  { %v858_v48 = vpop.f32.mrf.mxu1 }
  0x8f   :  { %1779 = vmatmul.msk.bf16.gmra.mxu1 %vm576_vm2, %v1550_v45  ;;  %1796 = vmatmul.msk.bf16.gmra.mxu3 %vm576_vm2, %v1686_v58  ;;  %v118_v45 = vld [vmem:[#allocation2 + $0x110] sm:$0xff] }
  0x91   :  { %723 = vmatmul.bf16.gmra.mxu0 %v1538_v51  ;;  %803 = vmatmul.bf16.gmra.mxu2 %v1666_v52 }
  0x92   :  { %v2258_v2 = vpop.f32.mrf.mxu3 }
  0x94   :  { %v2207_v53 = vpop.f32.mrf.mxu1 }
  0x9a   :  { %v2285_v11 = vpop.f32.mrf.mxu3 }
  0x9c   :  { %v2244_v62 = vpop.f32.mrf.mxu1 }
  0x9e   :  { %v689_v4 = vpop.f32.mrf.mxu0 }
  0x9f   :  { %1780 = vmatmul.msk.bf16.gmra.mxu1 %vm576_vm2, %v1558_v59  ;;  %v859_v6 = vadd.f32 %v858_v48, %v689_v4  ;;  %1797 = vmatmul.msk.bf16.gmra.mxu3 %vm576_vm2, %v1694_v17  ;;  %v1699_v48 = vld [vmem:[%s2986_s0 + $0x1b8] sm:$0xf0]  ;;  %v1689_v59 = vld [vmem:[%s2986_s0 + $0x1a0] sm:$0xf] }
  0xa0   :  { %v1702_v51 = vor.u32 %v1857_v47, %v1699_v48 }
  0xa1   :  { %v1018_v7 = vadd.f32 %v859_v6, %v84_v3  ;;  %728 = vmatmul.bf16.gmra.mxu0 %v1546_v1  ;;  %808 = vmatmul.bf16.gmra.mxu2 %v1674_v5  ;;  %v88_v1 = vld [vmem:[#allocation2 + $0x20] sm:$0xff]  ;;  %v1690_v3 = vor.u32 %v1856_v60, %v1689_v59 }
  0xa2   :  { %v2333_v29 = vpop.f32.mrf.mxu3 }
  0xa3   :  { %1083 = vst.msk [vmem:[#allocation2] sm:$0xff] %vm19_vm3, %v1018_v7 }
  0xa4   :  { %v2272_v8 = vpop.f32.mrf.mxu1  ;;  %v2283_v10 = vpop.f32.mrf.mxu2 }
  0xa6   :  { %v691_v12 = vpop.f32.mrf.mxu0 }
  0xa7   :  { %v861_v34 = vadd.f32 %v2207_v53, %v691_v12 }
  0xa9   :  { %v1019_v49 = vadd.f32 %v861_v34, %v85_v35  ;;  %v89_v34 = vld [vmem:[#allocation2 + $0x28] sm:$0xff] }
  0xaa   :  { %v1150_v18 = vld [vmem:[#allocation2] sm:$0xff]  ;;  %v2358_v39 = vpop.f32.mrf.mxu3 }
  0xab   :  { %v1218_v22 = vadd.f32 %v2279_v9, %v1150_v18  ;;  %1084 = vst.msk [vmem:[#allocation2 + $0x8] sm:$0xff] %vm19_vm3, %v1019_v49 }
  0xac   :  { %v2319_v23 = vpop.f32.mrf.mxu1  ;;  %v2331_v27 = vpop.f32.mrf.mxu2 }
  0xad   :  { %v1282_v26 = vmax.f32 %v1218_v22, 0.0  ;;  %v1827_v22 = vld [vmem:[%s2986_s0 + $0xc4] sm:$0xf] }
  0xae   :  { %v694_v30 = vpop.f32.mrf.mxu0 }
  0xaf   :  { %1781 = vmatmul.msk.bf16.gmra.mxu1 %vm576_vm2, %v1566_v19  ;;  %v1346_v32 = vpack.c.bf16 %v1282_v26, %v1282_v26  ;;  %v864_v36 = vadd.f32 %v2244_v62, %v694_v30  ;;  %1798 = vmatmul.msk.bf16.gmra.mxu3 %vm576_vm2, %v1702_v51  ;;  %v120_v26 = vld [vmem:[#allocation2 + $0x120] sm:$0xff]  ;;  %v1697_v51 = vld [vmem:[%s2986_s0 + $0x1b0] sm:$0xf] }
  0xb0   :  { %v1859_v30 = vld [vmem:[%s2986_s0 + $0x1c4] sm:$0xf] }
  0xb1   :  { %1411 = vst.msk [vmem:[%s2988_s3] sm:$0xf] %vm1410_vm4, %v1346_v32  ;;  %733 = vmatmul.bf16.gmra.mxu0 %v1554_v28  ;;  %813 = vmatmul.bf16.gmra.mxu2 %v1682_v31  ;;  %v1020_v52 = vadd.f32 %v864_v36, %v86_v40 }
  0xb2   :  { %v2403_v0 = vpop.f32.mrf.mxu3  ;;  %v1151_v7 = vld [vmem:[#allocation2 + $0x8] sm:$0xff] }
  0xb3   :  { %1085 = vst.msk [vmem:[#allocation2 + $0x10] sm:$0xff] %vm19_vm3, %v1020_v52  ;;  %v1858_v52 = vld [vmem:[%s2986_s0 + $0x1b4] sm:$0xf0] }
  0xb4   :  { %v2350_v33 = vpop.f32.mrf.mxu1  ;;  %v774_v38 = vpop.f32.mrf.mxu2 }
  0xb5   :  { %v944_v41 = vadd.f32 %v2258_v2, %v774_v38 }
  0xb6   :  { %v696_v42 = vpop.f32.mrf.mxu0 }
  0xb7   :  { %v866_v46 = vadd.f32 %v2272_v8, %v696_v42  ;;  %v1052_v53 = vadd.f32 %v944_v41, %v118_v45 }
  0xb9   :  { %v1021_v57 = vadd.f32 %v866_v46, %v87_v50  ;;  %1117 = vst.msk [vmem:[#allocation2 + $0x110] sm:$0xff] %vm19_vm3, %v1052_v53  ;;  %v1826_v46 = vld [vmem:[%s2986_s0 + $0xb4] sm:$0xf0] }
  0xba   :  { %v1152_v12 = vld [vmem:[#allocation2 + $0x10] sm:$0xff]  ;;  %v2416_v16 = vpop.f32.mrf.mxu3 }
  0xbb   :  { %1086 = vst.msk [vmem:[#allocation2 + $0x18] sm:$0xff] %vm19_vm3, %v1021_v57  ;;  %v1220_v13 = vadd.f32 %v2279_v9, %v1152_v12 }
  0xbc   :  { %v2393_v58 = vpop.f32.mrf.mxu1  ;;  %v776_v62 = vpop.f32.mrf.mxu2 }
  0xbd   :  { %v946_v37 = vadd.f32 %v2285_v11, %v776_v62  ;;  %v1219_v11 = vadd.f32 %v2279_v9, %v1151_v7  ;;  %v1284_v24 = vmax.f32 %v1220_v13, 0.0  ;;  %v90_v62 = vld [vmem:[#allocation2 + $0x30] sm:$0xff] }
  0xbe   :  { %v699_v2 = vpop.f32.mrf.mxu0 }
  0xbf   :  { %1782 = vmatmul.msk.bf16.gmra.mxu1 %vm576_vm2, %v1574_v54  ;;  %v869_v4 = vadd.f32 %v2319_v23, %v699_v2  ;;  %v1053_v5 = vadd.f32 %v946_v37, %v119_v61  ;;  %v1283_v17 = vmax.f32 %v1219_v11, 0.0  ;;  %v1579_v23 = vld [vmem:[%s2986_s0 + $0xc8] sm:$0xf0]  ;;  %v1348_v36 = vpack.c.bf16 %v1284_v24, %v1284_v24 }
  0xc0   :  { %v1184_v14 = vld [vmem:[#allocation2 + $0x110] sm:$0xff]  ;;  %v1582_v41 = vor.u32 %v1827_v22, %v1579_v23  ;;  %v1698_v37 = vor.u32 %v1858_v52, %v1697_v51 }
  0xc1   :  { %v1022_v6 = vadd.f32 %v869_v4, %v88_v1  ;;  %738 = vmatmul.bf16.gmra.mxu0 %v1562_v63  ;;  %1118 = vst.msk [vmem:[#allocation2 + $0x118] sm:$0xff] %vm19_vm3, %v1053_v5  ;;  %818 = vmatmul.bf16.gmra.mxu2 %v1690_v3  ;;  %v1252_v18 = vadd.f32 %v2279_v9, %v1184_v14  ;;  %v122_v5 = vld [vmem:[#allocation2 + $0x130] sm:$0xff]  ;;  %v91_v14 = vld [vmem:[#allocation2 + $0x38] sm:$0xff] }
  0xc2   :  { %v1153_v19 = vld [vmem:[#allocation2 + $0x18] sm:$0xff]  ;;  %v1347_v31 = vpack.c.bf16 %v1283_v17, %v1283_v17  ;;  %1413 = vst.msk [vmem:[%s2988_s3 + $0x8] sm:$0xf] %vm1410_vm4, %v1348_v36  ;;  %v2467_v59 = vpop.f32.mrf.mxu3  ;;  %v1829_v17 = vld [vmem:[%s2986_s0 + $0xd4] sm:$0xf] }
  0xc3   :  { %1087 = vst.msk [vmem:[#allocation2 + $0x20] sm:$0xff] %vm19_vm3, %v1022_v6  ;;  %v1221_v25 = vadd.f32 %v2279_v9, %v1153_v19  ;;  %v1316_v32 = vmax.f32 %v1252_v18, 0.0 }
  0xc4   :  { %v2412_v8 = vpop.f32.mrf.mxu1  ;;  %v779_v15 = vpop.f32.mrf.mxu2  ;;  %1412 = vst.msk [vmem:[%s2988_s3 + $0x4] sm:$0xf] %vm1410_vm4, %v1347_v31 }
  0xc5   :  { %v949_v20 = vadd.f32 %v2333_v29, %v779_v15  ;;  %v1707_v29 = vld [vmem:[%s2986_s0 + $0x1c8] sm:$0xf0]  ;;  %v1285_v38 = vmax.f32 %v1221_v25, 0.0  ;;  %v1380_v42 = vpack.c.bf16 %v1316_v32, %v1316_v32  ;;  %v1577_v32 = vld [vmem:[%s2986_s0 + $0xc0] sm:$0xf] }
  0xc6   :  { %v701_v21 = vpop.f32.mrf.mxu0  ;;  %v1710_v35 = vor.u32 %v1859_v30, %v1707_v29 }
  0xc7   :  { %v871_v28 = vadd.f32 %v2350_v33, %v701_v21  ;;  %v1569_v33 = vld [vmem:[%s2986_s0 + $0xb0] sm:$0xf]  ;;  %v1054_v45 = vadd.f32 %v949_v20, %v120_v26  ;;  %v1349_v47 = vpack.c.bf16 %v1285_v38, %v1285_v38  ;;  %1445 = vst.msk [vmem:[%s2988_s3 + $0x88] sm:$0xf] %vm1410_vm4, %v1380_v42  ;;  %v1587_v20 = vld [vmem:[%s2986_s0 + $0xd8] sm:$0xf0] }
  0xc8   :  { %v1185_v40 = vld [vmem:[#allocation2 + $0x118] sm:$0xff]  ;;  %1799 = vmatmul.msk.bf16.gmra.mxu3 %vm576_vm2, %v1710_v35  ;;  %v1570_v57 = vor.u32 %v1826_v46, %v1569_v33  ;;  %v1861_v21 = vld [vmem:[%s2986_s0 + $0x1d4] sm:$0xf]  ;;  %v1590_v31 = vor.u32 %v1829_v17, %v1587_v20 }
  0xc9   :  { %v1253_v43 = vadd.f32 %v2279_v9, %v1185_v40  ;;  %v1023_v49 = vadd.f32 %v871_v28, %v89_v34  ;;  %1414 = vst.msk [vmem:[%s2988_s3 + $0xc] sm:$0xf] %vm1410_vm4, %v1349_v47  ;;  %v1828_v34 = vld [vmem:[%s2986_s0 + $0xc4] sm:$0xf0]  ;;  %v1705_v40 = vld [vmem:[%s2986_s0 + $0x1c0] sm:$0xf] }
  0xca   :  { %v1154_v44 = vld [vmem:[#allocation2 + $0x20] sm:$0xff]  ;;  %1119 = vst.msk [vmem:[#allocation2 + $0x120] sm:$0xff] %vm19_vm3, %v1054_v45  ;;  %v2486_v7 = vpop.f32.mrf.mxu3  ;;  %v1578_v45 = vor.u32 %v1828_v34, %v1577_v32 }
  0xcb   :  { %v1222_v48 = vadd.f32 %v2279_v9, %v1154_v44  ;;  %v1317_v53 = vmax.f32 %v1253_v43, 0.0  ;;  %1088 = vst.msk [vmem:[#allocation2 + $0x28] sm:$0xff] %vm19_vm3, %v1023_v49  ;;  %v123_v43 = vld [vmem:[#allocation2 + $0x138] sm:$0xff]  ;;  %v92_v49 = vld [vmem:[#allocation2 + $0x40] sm:$0xff] }
  0xcc   :  { %v2451_v50 = vpop.f32.mrf.mxu1  ;;  %v781_v56 = vpop.f32.mrf.mxu2 }
  0xcd   :  { %v1286_v54 = vmax.f32 %v1222_v48, 0.0  ;;  %v1381_v60 = vpack.c.bf16 %v1317_v53, %v1317_v53  ;;  %v951_v61 = vadd.f32 %v2358_v39, %v781_v56 }
  0xce   :  { %v704_v63 = vpop.f32.mrf.mxu0 }
  0xcf   :  { %1783 = vmatmul.msk.bf16.gmra.mxu1 %vm576_vm2, %v1582_v41  ;;  %v1350_v1 = vpack.c.bf16 %v1286_v54, %v1286_v54  ;;  %v874_v2 = vadd.f32 %v2393_v58, %v704_v63  ;;  %1446 = vst.msk [vmem:[%s2988_s3 + $0x8c] sm:$0xf] %vm1410_vm4, %v1381_v60  ;;  %v1055_v3 = vadd.f32 %v951_v61, %v121_v55  ;;  %v1860_v41 = vld [vmem:[%s2986_s0 + $0x1c4] sm:$0xf0] }
  0xd0   :  { %v1706_v52 = vor.u32 %v1860_v41, %v1705_v40 }
  0xd1   :  { %1415 = vst.msk [vmem:[%s2988_s3 + $0x10] sm:$0xf] %vm1410_vm4, %v1350_v1  ;;  %v1024_v39 = vadd.f32 %v874_v2, %v90_v62  ;;  %743 = vmatmul.bf16.gmra.mxu0 %v1570_v57  ;;  %823 = vmatmul.bf16.gmra.mxu2 %v1698_v37  ;;  %v1186_v58 = vld [vmem:[#allocation2 + $0x120] sm:$0xff] }
  0xd2   :  { %1120 = vst.msk [vmem:[#allocation2 + $0x128] sm:$0xff] %vm19_vm3, %v1055_v3  ;;  %v1254_v11 = vadd.f32 %v2279_v9, %v1186_v58  ;;  %v1155_v12 = vld [vmem:[#allocation2 + $0x28] sm:$0xff]  ;;  %v2531_v46 = vpop.f32.mrf.mxu3  ;;  %v124_v37 = vld [vmem:[#allocation2 + $0x140] sm:$0xff] }
  0xd3   :  { %1089 = vst.msk [vmem:[#allocation2 + $0x30] sm:$0xff] %vm19_vm3, %v1024_v39  ;;  %v1223_v18 = vadd.f32 %v2279_v9, %v1155_v12  ;;  %v93_v58 = vld [vmem:[#allocation2 + $0x48] sm:$0xff] }
  0xd4   :  { %v2484_v4 = vpop.f32.mrf.mxu1  ;;  %v784_v6 = vpop.f32.mrf.mxu2  ;;  %v1318_v22 = vmax.f32 %v1254_v11, 0.0 }
  0xd5   :  { %v954_v13 = vadd.f32 %v2403_v0, %v784_v6  ;;  %v1715_v0 = vld [vmem:[%s2986_s0 + $0x1d8] sm:$0xf0]  ;;  %v1287_v25 = vmax.f32 %v1223_v18, 0.0  ;;  %v1831_v6 = vld [vmem:[%s2986_s0 + $0xe4] sm:$0xf] }
  0xd6   :  { %v706_v15 = vpop.f32.mrf.mxu0  ;;  %v1718_v24 = vor.u32 %v1861_v21, %v1715_v0  ;;  %v1382_v30 = vpack.c.bf16 %v1318_v22, %v1318_v22  ;;  %v1585_v0 = vld [vmem:[%s2986_s0 + $0xd0] sm:$0xf]  ;;  %v1830_v22 = vld [vmem:[%s2986_s0 + $0xd4] sm:$0xf0] }
  0xd7   :  { %v876_v19 = vadd.f32 %v2412_v8, %v706_v15  ;;  %v1056_v23 = vadd.f32 %v954_v13, %v122_v5  ;;  %v1351_v35 = vpack.c.bf16 %v1287_v25, %v1287_v25  ;;  %v1595_v13 = vld [vmem:[%s2986_s0 + $0xe8] sm:$0xf0]  ;;  %v1713_v25 = vld [vmem:[%s2986_s0 + $0x1d0] sm:$0xf] }
  0xd8   :  { %1800 = vmatmul.msk.bf16.gmra.mxu3 %vm576_vm2, %v1718_v24  ;;  %1447 = vst.msk [vmem:[%s2988_s3 + $0x90] sm:$0xf] %vm1410_vm4, %v1382_v30  ;;  %v1598_v21 = vor.u32 %v1831_v6, %v1595_v13 }
  0xd9   :  { %v1187_v26 = vld [vmem:[#allocation2 + $0x128] sm:$0xff]  ;;  %v1025_v28 = vadd.f32 %v876_v19, %v91_v14  ;;  %1121 = vst.msk [vmem:[#allocation2 + $0x130] sm:$0xff] %vm19_vm3, %v1056_v23  ;;  %v1863_v14 = vld [vmem:[%s2986_s0 + $0x1e4] sm:$0xf] }
  0xda   :  { %v1255_v8 = vadd.f32 %v2279_v9, %v1187_v26  ;;  %v1156_v29 = vld [vmem:[#allocation2 + $0x30] sm:$0xff]  ;;  %1416 = vst.msk [vmem:[%s2988_s3 + $0x14] sm:$0xf] %vm1410_vm4, %v1351_v35  ;;  %v2550_v2 = vpop.f32.mrf.mxu3  ;;  %v1862_v26 = vld [vmem:[%s2986_s0 + $0x1d4] sm:$0xf0] }
  0xdb   :  { %v1224_v36 = vadd.f32 %v2279_v9, %v1156_v29  ;;  %1090 = vst.msk [vmem:[#allocation2 + $0x38] sm:$0xff] %vm19_vm3, %v1025_v28  ;;  %v1714_v41 = vor.u32 %v1862_v26, %v1713_v25 }
  0xdc   :  { %v2515_v38 = vpop.f32.mrf.mxu1  ;;  %v1319_v33 = vmax.f32 %v1255_v8, 0.0  ;;  %v786_v44 = vpop.f32.mrf.mxu2  ;;  %v125_v8 = vld [vmem:[#allocation2 + $0x148] sm:$0xff] }
  0xdd   :  { %v1288_v42 = vmax.f32 %v1224_v36, 0.0  ;;  %v956_v48 = vadd.f32 %v2416_v16, %v786_v44  ;;  %v94_v36 = vld [vmem:[#allocation2 + $0x50] sm:$0xff] }
  0xde   :  { %v1383_v47 = vpack.c.bf16 %v1319_v33, %v1319_v33  ;;  %v709_v51 = vpop.f32.mrf.mxu0 }
  0xdf   :  { %1784 = vmatmul.msk.bf16.gmra.mxu1 %vm576_vm2, %v1590_v31  ;;  %v1352_v53 = vpack.c.bf16 %v1288_v42, %v1288_v42  ;;  %v879_v54 = vadd.f32 %v2451_v50, %v709_v51  ;;  %v1057_v55 = vadd.f32 %v956_v48, %v123_v43  ;;  %v1586_v31 = vor.u32 %v1830_v22, %v1585_v0 }
  0xe0   :  { %1448 = vst.msk [vmem:[%s2988_s3 + $0x94] sm:$0xf] %vm1410_vm4, %v1383_v47  ;;  %v1188_v16 = vld [vmem:[#allocation2 + $0x130] sm:$0xff] }
  0xe1   :  { %1417 = vst.msk [vmem:[%s2988_s3 + $0x18] sm:$0xf] %vm1410_vm4, %v1352_v53  ;;  %v1026_v56 = vadd.f32 %v879_v54, %v92_v49  ;;  %748 = vmatmul.bf16.gmra.mxu0 %v1578_v45  ;;  %v1256_v57 = vadd.f32 %v2279_v9, %v1188_v16  ;;  %828 = vmatmul.bf16.gmra.mxu2 %v1706_v52  ;;  %v126_v52 = vld [vmem:[#allocation2 + $0x150] sm:$0xff] }
  0xe2   :  { %v1157_v60 = vld [vmem:[#allocation2 + $0x38] sm:$0xff]  ;;  %1122 = vst.msk [vmem:[#allocation2 + $0x138] sm:$0xff] %vm19_vm3, %v1057_v55  ;;  %v2593_v32 = vpop.f32.mrf.mxu3 }
  0xe3   :  { %v1225_v50 = vadd.f32 %v2279_v9, %v1157_v60  ;;  %1091 = vst.msk [vmem:[#allocation2 + $0x40] sm:$0xff] %vm19_vm3, %v1026_v56  ;;  %v1320_v62 = vmax.f32 %v1256_v57, 0.0  ;;  %v95_v56 = vld [vmem:[#allocation2 + $0x58] sm:$0xff]  ;;  %v1833_v60 = vld [vmem:[%s2986_s0 + $0xf4] sm:$0xf] }
  0xe4   :  { %v2548_v61 = vpop.f32.mrf.mxu1  ;;  %v789_v1 = vpop.f32.mrf.mxu2 }
  0xe5   :  { %v1289_v63 = vmax.f32 %v1225_v50, 0.0  ;;  %v1384_v3 = vpack.c.bf16 %v1320_v62, %v1320_v62  ;;  %v959_v39 = vadd.f32 %v2467_v59, %v789_v1  ;;  %v1723_v59 = vld [vmem:[%s2986_s0 + $0x1e8] sm:$0xf0] }
  0xe6   :  { %v711_v5 = vpop.f32.mrf.mxu0  ;;  %v1726_v17 = vor.u32 %v1863_v14, %v1723_v59  ;;  %v1721_v59 = vld [vmem:[%s2986_s0 + $0x1e0] sm:$0xf] }
  0xe7   :  { %v1353_v11 = vpack.c.bf16 %v1289_v63, %v1289_v63  ;;  %v881_v12 = vadd.f32 %v2484_v4, %v711_v5  ;;  %1449 = vst.msk [vmem:[%s2988_s3 + $0x98] sm:$0xf] %vm1410_vm4, %v1384_v3  ;;  %v1058_v15 = vadd.f32 %v959_v39, %v124_v37  ;;  %v1603_v63 = vld [vmem:[%s2986_s0 + $0xf8] sm:$0xf0]  ;;  %v1865_v37 = vld [vmem:[%s2986_s0 + $0x1f4] sm:$0xf] }
  0xe8   :  { %1801 = vmatmul.msk.bf16.gmra.mxu3 %vm576_vm2, %v1726_v17  ;;  %v1606_v6 = vor.u32 %v1833_v60, %v1603_v63  ;;  %v1866_v63 = vld [vmem:[%s2986_s0 + $0x1f4] sm:$0xf0] }
  0xe9   :  { %1418 = vst.msk [vmem:[%s2988_s3 + $0x1c] sm:$0xf] %vm1410_vm4, %v1353_v11  ;;  %v1189_v4 = vld [vmem:[#allocation2 + $0x138] sm:$0xff]  ;;  %v1027_v18 = vadd.f32 %v881_v12, %v93_v58  ;;  %v1593_v11 = vld [vmem:[%s2986_s0 + $0xe0] sm:$0xf] }
  0xea   :  { %v1257_v19 = vadd.f32 %v2279_v9, %v1189_v4  ;;  %v1158_v20 = vld [vmem:[#allocation2 + $0x40] sm:$0xff]  ;;  %1123 = vst.msk [vmem:[#allocation2 + $0x140] sm:$0xff] %vm19_vm3, %v1058_v15  ;;  %v2612_v54 = vpop.f32.mrf.mxu3  ;;  %v1832_v12 = vld [vmem:[%s2986_s0 + $0xe4] sm:$0xf0] }
  0xeb   :  { %v1226_v23 = vadd.f32 %v2279_v9, %v1158_v20  ;;  %1092 = vst.msk [vmem:[#allocation2 + $0x48] sm:$0xff] %vm19_vm3, %v1027_v18  ;;  %v1864_v15 = vld [vmem:[%s2986_s0 + $0x1e4] sm:$0xf0]  ;;  %v127_v18 = vld [vmem:[#allocation2 + $0x158] sm:$0xff]  ;;  %v1594_v20 = vor.u32 %v1832_v12, %v1593_v11 }
  0xec   :  { %v2585_v24 = vpop.f32.mrf.mxu1  ;;  %v1321_v28 = vmax.f32 %v1257_v19, 0.0  ;;  %v791_v29 = vpop.f32.mrf.mxu2  ;;  %v1722_v26 = vor.u32 %v1864_v15, %v1721_v59 }
  0xed   :  { %v1290_v30 = vmax.f32 %v1226_v23, 0.0  ;;  %v961_v35 = vadd.f32 %v2486_v7, %v791_v29  ;;  %v96_v23 = vld [vmem:[#allocation2 + $0x60] sm:$0xff] }
  0xee   :  { %v1385_v34 = vpack.c.bf16 %v1321_v28, %v1321_v28  ;;  %v714_v40 = vpop.f32.mrf.mxu0 }
  0xef   :  { %1785 = vmatmul.msk.bf16.gmra.mxu1 %vm576_vm2, %v1598_v21  ;;  %v1354_v33 = vpack.c.bf16 %v1290_v30, %v1290_v30  ;;  %v884_v42 = vadd.f32 %v2515_v38, %v714_v40  ;;  %v1059_v43 = vadd.f32 %v961_v35, %v125_v8 }
  0xf0   :  { %1450 = vst.msk [vmem:[%s2988_s3 + $0x9c] sm:$0xf] %vm1410_vm4, %v1385_v34 }
  0xf1   :  { %1419 = vst.msk [vmem:[%s2988_s3 + $0x20] sm:$0xf] %vm1410_vm4, %v1354_v33  ;;  %v1190_v7 = vld [vmem:[#allocation2 + $0x140] sm:$0xff]  ;;  %v1028_v44 = vadd.f32 %v884_v42, %v94_v36  ;;  %753 = vmatmul.bf16.gmra.mxu0 %v1586_v31  ;;  %833 = vmatmul.bf16.gmra.mxu2 %v1714_v41 }
  0xf2   :  { %v1258_v45 = vadd.f32 %v2279_v9, %v1190_v7  ;;  %v1159_v47 = vld [vmem:[#allocation2 + $0x48] sm:$0xff]  ;;  %1124 = vst.msk [vmem:[#allocation2 + $0x148] sm:$0xff] %vm19_vm3, %v1059_v43  ;;  %v2655_v21 = vpop.f32.mrf.mxu3  ;;  %v128_v41 = vld [vmem:[#allocation2 + $0x160] sm:$0xff] }
  0xf3   :  { %v1227_v38 = vadd.f32 %v2279_v9, %v1159_v47  ;;  %1093 = vst.msk [vmem:[#allocation2 + $0x50] sm:$0xff] %vm19_vm3, %v1028_v44  ;;  %v97_v44 = vld [vmem:[#allocation2 + $0x68] sm:$0xff] }
  0xf4   :  { %v2610_v48 = vpop.f32.mrf.mxu1  ;;  %v1322_v49 = vmax.f32 %v1258_v45, 0.0  ;;  %v794_v53 = vpop.f32.mrf.mxu2 }
  0xf5   :  { %v1291_v51 = vmax.f32 %v1227_v38, 0.0  ;;  %v964_v16 = vadd.f32 %v2531_v46, %v794_v53  ;;  %v1731_v46 = vld [vmem:[%s2986_s0 + $0x1f8] sm:$0xf0] }
  0xf6   :  { %v1386_v55 = vpack.c.bf16 %v1322_v49, %v1322_v49  ;;  %v716_v57 = vpop.f32.mrf.mxu0  ;;  %v1734_v3 = vor.u32 %v1865_v37, %v1731_v46  ;;  %v1835_v49 = vld [vmem:[%s2986_s0 + $0x104] sm:$0xf] }
  0xf7   :  { %v1355_v50 = vpack.c.bf16 %v1291_v51, %v1291_v51  ;;  %v886_v62 = vadd.f32 %v2548_v61, %v716_v57  ;;  %v1060_v1 = vadd.f32 %v964_v16, %v126_v52  ;;  %v1611_v51 = vld [vmem:[%s2986_s0 + $0x108] sm:$0xf0]  ;;  %v1834_v57 = vld [vmem:[%s2986_s0 + $0xf4] sm:$0xf0] }
  0xf8   :  { %1451 = vst.msk [vmem:[%s2988_s3 + $0xa0] sm:$0xf] %vm1410_vm4, %v1386_v55  ;;  %1802 = vmatmul.msk.bf16.gmra.mxu3 %vm576_vm2, %v1734_v3  ;;  %v1614_v16 = vor.u32 %v1835_v49, %v1611_v51 }
  0xf9   :  { %1420 = vst.msk [vmem:[%s2988_s3 + $0x24] sm:$0xf] %vm1410_vm4, %v1355_v50  ;;  %v1191_v61 = vld [vmem:[#allocation2 + $0x148] sm:$0xff]  ;;  %v1029_v39 = vadd.f32 %v886_v62, %v95_v56  ;;  %v1601_v56 = vld [vmem:[%s2986_s0 + $0xf0] sm:$0xf] }
  0xfa   :  { %v1259_v58 = vadd.f32 %v2279_v9, %v1191_v61  ;;  %v1160_v5 = vld [vmem:[#allocation2 + $0x50] sm:$0xff]  ;;  %1125 = vst.msk [vmem:[#allocation2 + $0x150] sm:$0xff] %vm19_vm3, %v1060_v1  ;;  %v2674_v42 = vpop.f32.mrf.mxu3  ;;  %v129_v1 = vld [vmem:[#allocation2 + $0x168] sm:$0xff]  ;;  %v1602_v61 = vor.u32 %v1834_v57, %v1601_v56 }
  0xfb   :  { %v1228_v13 = vadd.f32 %v2279_v9, %v1160_v5  ;;  %1094 = vst.msk [vmem:[#allocation2 + $0x58] sm:$0xff] %vm19_vm3, %v1029_v39  ;;  %v1729_v62 = vld [vmem:[%s2986_s0 + $0x1f0] sm:$0xf] }
  0xfc   :  { %v2647_v14 = vpop.f32.mrf.mxu1  ;;  %v1323_v17 = vmax.f32 %v1259_v58, 0.0  ;;  %v796_v19 = vpop.f32.mrf.mxu2  ;;  %v1730_v12 = vor.u32 %v1866_v63, %v1729_v62 }
  0xfd   :  { %v1292_v4 = vmax.f32 %v1228_v13, 0.0  ;;  %v966_v22 = vadd.f32 %v2550_v2, %v796_v19 }
  0xfe   :  { %v1387_v0 = vpack.c.bf16 %v1323_v17, %v1323_v17  ;;  %v719_v25 = vpop.f32.mrf.mxu0 }
  0xff   :  { %1786 = vmatmul.msk.bf16.gmra.mxu1 %vm576_vm2, %v1606_v6  ;;  %v1356_v28 = vpack.c.bf16 %v1292_v4, %v1292_v4  ;;  %v889_v30 = vadd.f32 %v2585_v24, %v719_v25  ;;  %v1061_v8 = vadd.f32 %v966_v22, %v127_v18  ;;  %v98_v6 = vld [vmem:[#allocation2 + $0x70] sm:$0xff] }
 0x100   :  { %1452 = vst.msk [vmem:[%s2988_s3 + $0xa4] sm:$0xf] %vm1410_vm4, %v1387_v0  ;;  %v130_v22 = vld [vmem:[#allocation2 + $0x170] sm:$0xff] }
 0x101   :  { %1421 = vst.msk [vmem:[%s2988_s3 + $0x28] sm:$0xf] %vm1410_vm4, %v1356_v28  ;;  %v1192_v2 = vld [vmem:[#allocation2 + $0x150] sm:$0xff]  ;;  %v1030_v29 = vadd.f32 %v889_v30, %v96_v23  ;;  %758 = vmatmul.bf16.gmra.mxu0 %v1594_v20  ;;  %838 = vmatmul.bf16.gmra.mxu2 %v1722_v26  ;;  %v99_v30 = vld [vmem:[#allocation2 + $0x78] sm:$0xff] }
 0x102   :  { %v1260_v31 = vadd.f32 %v2279_v9, %v1192_v2  ;;  %v1161_v34 = vld [vmem:[#allocation2 + $0x58] sm:$0xff]  ;;  %1126 = vst.msk [vmem:[#allocation2 + $0x158] sm:$0xff] %vm19_vm3, %v1061_v8  ;;  %v2708_v39 = vpop.f32.mrf.mxu3 }
 0x103   :  { %v1229_v24 = vadd.f32 %v2279_v9, %v1161_v34  ;;  %1095 = vst.msk [vmem:[#allocation2 + $0x60] sm:$0xff] %vm19_vm3, %v1030_v29 }
 0x104   :  { %v2672_v35 = vpop.f32.mrf.mxu1  ;;  %v1324_v36 = vmax.f32 %v1260_v31, 0.0  ;;  %v799_v33 = vpop.f32.mrf.mxu2 }
 0x105   :  { %v1293_v40 = vmax.f32 %v1229_v24, 0.0  ;;  %v969_v7 = vadd.f32 %v2593_v32, %v799_v33 }
 0x106   :  { %v1388_v43 = vpack.c.bf16 %v1324_v36, %v1324_v36  ;;  %v721_v45 = vpop.f32.mrf.mxu0 }
 0x107   :  { %v1357_v47 = vpack.c.bf16 %v1293_v40, %v1293_v40  ;;  %v891_v38 = vadd.f32 %v2610_v48, %v721_v45  ;;  %v1062_v52 = vadd.f32 %v969_v7, %v128_v41 }
 0x108   :  { %1453 = vst.msk [vmem:[%s2988_s3 + $0xa8] sm:$0xf] %vm1410_vm4, %v1388_v43  ;;  %v131_v43 = vld [vmem:[#allocation2 + $0x178] sm:$0xff] }
 0x109   :  { %1422 = vst.msk [vmem:[%s2988_s3 + $0x2c] sm:$0xf] %vm1410_vm4, %v1357_v47  ;;  %v1193_v32 = vld [vmem:[#allocation2 + $0x158] sm:$0xff]  ;;  %v1031_v48 = vadd.f32 %v891_v38, %v97_v44  ;;  %v100_v38 = vld [vmem:[#allocation2 + $0x80] sm:$0xff] }
 0x10a   :  { %v1261_v53 = vadd.f32 %v2279_v9, %v1193_v32  ;;  %v1162_v55 = vld [vmem:[#allocation2 + $0x60] sm:$0xff]  ;;  %1127 = vst.msk [vmem:[#allocation2 + $0x160] sm:$0xff] %vm19_vm3, %v1062_v52  ;;  %v2725_v25 = vpop.f32.mrf.mxu3 }
 0x10b   :  { %v1230_v60 = vadd.f32 %v2279_v9, %v1162_v55  ;;  %1096 = vst.msk [vmem:[#allocation2 + $0x68] sm:$0xff] %vm19_vm3, %v1031_v48 }
 0x10c   :  { %v898_v50 = vpop.f32.mrf.mxu1  ;;  %v1325_v37 = vmax.f32 %v1261_v53, 0.0  ;;  %v801_v3 = vpop.f32.mrf.mxu2 }
 0x10d   :  { %v1294_v46 = vmax.f32 %v1230_v60, 0.0  ;;  %v971_v5 = vadd.f32 %v2612_v54, %v801_v3 }
 0x10e   :  { %v1389_v58 = vpack.c.bf16 %v1325_v37, %v1325_v37  ;;  %v724_v11 = vpop.f32.mrf.mxu0 }
 0x10f   :  { %1787 = vmatmul.msk.bf16.gmra.mxu1 %vm576_vm2, %v1614_v16  ;;  %v1358_v13 = vpack.c.bf16 %v1294_v46, %v1294_v46  ;;  %v894_v59 = vadd.f32 %v2647_v14, %v724_v11  ;;  %v1063_v15 = vadd.f32 %v971_v5, %v129_v1  ;;  %v101_v1 = vld [vmem:[#allocation2 + $0x88] sm:$0xff] }
 0x110   :  { %1454 = vst.msk [vmem:[%s2988_s3 + $0xac] sm:$0xf] %vm1410_vm4, %v1389_v58 }
 0x111   :  { %1423 = vst.msk [vmem:[%s2988_s3 + $0x30] sm:$0xf] %vm1410_vm4, %v1358_v13  ;;  %v1194_v54 = vld [vmem:[#allocation2 + $0x160] sm:$0xff]  ;;  %v1032_v17 = vadd.f32 %v894_v59, %v98_v6  ;;  %763 = vmatmul.bf16.gmra.mxu0 %v1602_v61  ;;  %843 = vmatmul.bf16.gmra.mxu2 %v1730_v12 }
 0x112   :  { %v1262_v4 = vadd.f32 %v2279_v9, %v1194_v54  ;;  %v1163_v18 = vld [vmem:[#allocation2 + $0x68] sm:$0xff]  ;;  %1128 = vst.msk [vmem:[#allocation2 + $0x168] sm:$0xff] %vm19_vm3, %v1063_v15  ;;  %v2741_v44 = vpop.f32.mrf.mxu3 }
 0x113   :  { %v1231_v14 = vadd.f32 %v2279_v9, %v1163_v18  ;;  %1097 = vst.msk [vmem:[#allocation2 + $0x70] sm:$0xff] %vm19_vm3, %v1032_v17  ;;  %v133_v17 = vld [vmem:[#allocation2 + $0x188] sm:$0xff] }
 0x114   :  { %v900_v19 = vpop.f32.mrf.mxu1  ;;  %v1326_v20 = vmax.f32 %v1262_v4, 0.0  ;;  %v804_v23 = vpop.f32.mrf.mxu2 }
 0x115   :  { %v1295_v0 = vmax.f32 %v1231_v14, 0.0  ;;  %v974_v28 = vadd.f32 %v2655_v21, %v804_v23 }
 0x116   :  { %v1390_v26 = vpack.c.bf16 %v1326_v20, %v1326_v20  ;;  %v726_v8 = vpop.f32.mrf.mxu0 }
 0x117   :  { %v1359_v2 = vpack.c.bf16 %v1295_v0, %v1295_v0  ;;  %v896_v29 = vadd.f32 %v2672_v35, %v726_v8  ;;  %v1064_v31 = vadd.f32 %v974_v28, %v130_v22 }
 0x118   :  { %1455 = vst.msk [vmem:[%s2988_s3 + $0xb0] sm:$0xf] %vm1410_vm4, %v1390_v26 }
 0x119   :  { %1424 = vst.msk [vmem:[%s2988_s3 + $0x34] sm:$0xf] %vm1410_vm4, %v1359_v2  ;;  %v1195_v34 = vld [vmem:[#allocation2 + $0x168] sm:$0xff]  ;;  %v1033_v24 = vadd.f32 %v896_v29, %v99_v30 }
 0x11a   :  { %v1263_v21 = vadd.f32 %v2279_v9, %v1195_v34  ;;  %v1164_v36 = vld [vmem:[#allocation2 + $0x70] sm:$0xff]  ;;  %1129 = vst.msk [vmem:[#allocation2 + $0x170] sm:$0xff] %vm19_vm3, %v1064_v31  ;;  %v2756_v63 = vpop.f32.mrf.mxu3 }
 0x11b   :  { %v1232_v35 = vadd.f32 %v2279_v9, %v1164_v36  ;;  %1098 = vst.msk [vmem:[#allocation2 + $0x78] sm:$0xff] %vm19_vm3, %v1033_v24  ;;  %v134_v24 = vld [vmem:[#allocation2 + $0x190] sm:$0xff] }
 0x11c   :  { %v903_v40 = vpop.f32.mrf.mxu1  ;;  %v1327_v41 = vmax.f32 %v1263_v21, 0.0  ;;  %v806_v7 = vpop.f32.mrf.mxu2 }
 0x11d   :  { %v1296_v33 = vmax.f32 %v1232_v35, 0.0  ;;  %v976_v47 = vadd.f32 %v2674_v42, %v806_v7 }
 0x11e   :  { %v1391_v45 = vpack.c.bf16 %v1327_v41, %v1327_v41  ;;  %v729_v49 = vpop.f32.mrf.mxu0 }
 0x11f   :  { %v1360_v51 = vpack.c.bf16 %v1296_v33, %v1296_v33  ;;  %v899_v52 = vadd.f32 %v898_v50, %v729_v49  ;;  %v1065_v32 = vadd.f32 %v976_v47, %v131_v43  ;;  %v132_v50 = vld [vmem:[#allocation2 + $0x180] sm:$0xff] }
 0x120   :  { %1456 = vst.msk [vmem:[%s2988_s3 + $0xb4] sm:$0xf] %vm1410_vm4, %v1391_v45 }
 0x121   :  { %1425 = vst.msk [vmem:[%s2988_s3 + $0x38] sm:$0xf] %vm1410_vm4, %v1360_v51  ;;  %v1196_v48 = vld [vmem:[#allocation2 + $0x170] sm:$0xff]  ;;  %v1034_v53 = vadd.f32 %v899_v52, %v100_v38 }
 0x122   :  { %v1264_v55 = vadd.f32 %v2279_v9, %v1196_v48  ;;  %v1165_v42 = vld [vmem:[#allocation2 + $0x78] sm:$0xff]  ;;  %1130 = vst.msk [vmem:[#allocation2 + $0x178] sm:$0xff] %vm19_vm3, %v1065_v32  ;;  %v988_v23 = vpop.f32.mrf.mxu3 }
 0x123   :  { %v1233_v16 = vadd.f32 %v2279_v9, %v1165_v42  ;;  %1099 = vst.msk [vmem:[#allocation2 + $0x80] sm:$0xff] %vm19_vm3, %v1034_v53  ;;  %v135_v53 = vld [vmem:[#allocation2 + $0x198] sm:$0xff] }
 0x124   :  { %v905_v56 = vpop.f32.mrf.mxu1  ;;  %v1328_v57 = vmax.f32 %v1264_v55, 0.0  ;;  %v809_v62 = vpop.f32.mrf.mxu2 }
 0x125   :  { %v1297_v60 = vmax.f32 %v1233_v16, 0.0  ;;  %v979_v46 = vadd.f32 %v2708_v39, %v809_v62 }
 0x126   :  { %v1392_v37 = vpack.c.bf16 %v1328_v57, %v1328_v57  ;;  %v731_v3 = vpop.f32.mrf.mxu0 }
 0x127   :  { %v1361_v61 = vpack.c.bf16 %v1297_v60, %v1297_v60  ;;  %v901_v58 = vadd.f32 %v900_v19, %v731_v3  ;;  %v1066_v5 = vadd.f32 %v979_v46, %v132_v50  ;;  %v102_v19 = vld [vmem:[#allocation2 + $0x90] sm:$0xff] }
 0x128   :  { %1457 = vst.msk [vmem:[%s2988_s3 + $0xb8] sm:$0xf] %vm1410_vm4, %v1392_v37 }
 0x129   :  { %1426 = vst.msk [vmem:[%s2988_s3 + $0x3c] sm:$0xf] %vm1410_vm4, %v1361_v61  ;;  %v1197_v6 = vld [vmem:[#allocation2 + $0x178] sm:$0xff]  ;;  %v1035_v11 = vadd.f32 %v901_v58, %v101_v1 }
 0x12a   :  { %v1265_v12 = vadd.f32 %v2279_v9, %v1197_v6  ;;  %v1166_v39 = vld [vmem:[#allocation2 + $0x80] sm:$0xff]  ;;  %1131 = vst.msk [vmem:[#allocation2 + $0x180] sm:$0xff] %vm19_vm3, %v1066_v5  ;;  %v990_v47 = vpop.f32.mrf.mxu3 }
 0x12b   :  { %v1234_v13 = vadd.f32 %v2279_v9, %v1166_v39  ;;  %1100 = vst.msk [vmem:[#allocation2 + $0x88] sm:$0xff] %vm19_vm3, %v1035_v11  ;;  %v136_v11 = vld [vmem:[#allocation2 + $0x1a0] sm:$0xff] }
 0x12c   :  { %v908_v59 = vpop.f32.mrf.mxu1  ;;  %v1329_v15 = vmax.f32 %v1265_v12, 0.0  ;;  %v811_v4 = vpop.f32.mrf.mxu2 }
 0x12d   :  { %v1298_v54 = vmax.f32 %v1234_v13, 0.0  ;;  %v981_v14 = vadd.f32 %v2725_v25, %v811_v4 }
 0x12e   :  { %v1393_v18 = vpack.c.bf16 %v1329_v15, %v1329_v15  ;;  %v734_v20 = vpop.f32.mrf.mxu0 }
 0x12f   :  { %v1362_v0 = vpack.c.bf16 %v1298_v54, %v1298_v54  ;;  %v904_v22 = vadd.f32 %v903_v40, %v734_v20  ;;  %v1067_v26 = vadd.f32 %v981_v14, %v133_v17  ;;  %v103_v40 = vld [vmem:[#allocation2 + $0x98] sm:$0xff] }
 0x130   :  { %1458 = vst.msk [vmem:[%s2988_s3 + $0xbc] sm:$0xf] %vm1410_vm4, %v1393_v18 }
 0x131   :  { %1427 = vst.msk [vmem:[%s2988_s3 + $0x40] sm:$0xf] %vm1410_vm4, %v1362_v0  ;;  %v1198_v28 = vld [vmem:[#allocation2 + $0x180] sm:$0xff]  ;;  %v1036_v30 = vadd.f32 %v904_v22, %v102_v19 }
 0x132   :  { %v1266_v25 = vadd.f32 %v2279_v9, %v1198_v28  ;;  %v1167_v8 = vld [vmem:[#allocation2 + $0x88] sm:$0xff]  ;;  %1132 = vst.msk [vmem:[#allocation2 + $0x188] sm:$0xff] %vm19_vm3, %v1067_v26  ;;  %v993_v58 = vpop.f32.mrf.mxu3 }
 0x133   :  { %v1235_v2 = vadd.f32 %v2279_v9, %v1167_v8  ;;  %1101 = vst.msk [vmem:[#allocation2 + $0x90] sm:$0xff] %vm19_vm3, %v1036_v30  ;;  %v137_v28 = vld [vmem:[#allocation2 + $0x1a8] sm:$0xff] }
 0x134   :  { %v910_v29 = vpop.f32.mrf.mxu1  ;;  %v1330_v31 = vmax.f32 %v1266_v25, 0.0  ;;  %v814_v21 = vpop.f32.mrf.mxu2 }
 0x135   :  { %v1299_v34 = vmax.f32 %v1235_v2, 0.0  ;;  %v984_v35 = vadd.f32 %v2741_v44, %v814_v21  ;;  %v2796_v44 = vld [vmem:[%s2987_s2] ss:$0 sm:$0xff] }
 0x136   :  { %v1394_v36 = vpack.c.bf16 %v1330_v31, %v1330_v31  ;;  %v736_v41 = vpop.f32.mrf.mxu0 }
 0x137   :  { %v1363_v33 = vpack.c.bf16 %v1299_v34, %v1299_v34  ;;  %v906_v43 = vadd.f32 %v905_v56, %v736_v41  ;;  %v1068_v9 = vadd.f32 %v984_v35, %v134_v24  ;;  %v104_v56 = vld [vmem:[#allocation2 + $0xa0] sm:$0xff] }
 0x138   :  { %1459 = vst.msk [vmem:[%s2988_s3 + $0xc0] sm:$0xf] %vm1410_vm4, %v1394_v36 }
 0x139   :  { %1428 = vst.msk [vmem:[%s2988_s3 + $0x44] sm:$0xf] %vm1410_vm4, %v1363_v33  ;;  %v1199_v7 = vld [vmem:[#allocation2 + $0x188] sm:$0xff]  ;;  %v1037_v45 = vadd.f32 %v906_v43, %v103_v40 }
 0x13a   :  { %v1267_v38 = vadd.f32 %v2796_v44, %v1199_v7  ;;  %v1168_v49 = vld [vmem:[#allocation2 + $0x90] sm:$0xff]  ;;  %1133 = vst.msk [vmem:[#allocation2 + $0x190] sm:$0xff] %vm19_vm3, %v1068_v9  ;;  %v995_v25 = vpop.f32.mrf.mxu3 }
 0x13b   :  { %v1236_v51 = vadd.f32 %v2796_v44, %v1168_v49  ;;  %1102 = vst.msk [vmem:[#allocation2 + $0x98] sm:$0xff] %vm19_vm3, %v1037_v45  ;;  %v138_v45 = vld [vmem:[#allocation2 + $0x1b0] sm:$0xff] }
 0x13c   :  { %v913_v52 = vpop.f32.mrf.mxu1  ;;  %v1331_v32 = vmax.f32 %v1267_v38, 0.0  ;;  %v816_v55 = vpop.f32.mrf.mxu2 }
 0x13d   :  { %v1300_v48 = vmax.f32 %v1236_v51, 0.0  ;;  %v986_v16 = vadd.f32 %v2756_v63, %v816_v55  ;;  %v107_v51 = vld [vmem:[#allocation2 + $0xb8] sm:$0xff] }
 0x13e   :  { %v1395_v42 = vpack.c.bf16 %v1331_v32, %v1331_v32  ;;  %v739_v57 = vpop.f32.mrf.mxu0 }
 0x13f   :  { %v1364_v60 = vpack.c.bf16 %v1300_v48, %v1300_v48  ;;  %v909_v50 = vadd.f32 %v908_v59, %v739_v57  ;;  %v1069_v62 = vadd.f32 %v986_v16, %v135_v53  ;;  %v105_v59 = vld [vmem:[#allocation2 + $0xa8] sm:$0xff] }
 0x140   :  { %1460 = vst.msk [vmem:[%s2988_s3 + $0xc4] sm:$0xf] %vm1410_vm4, %v1395_v42 }
 0x141   :  { %1429 = vst.msk [vmem:[%s2988_s3 + $0x48] sm:$0xf] %vm1410_vm4, %v1364_v60  ;;  %v1200_v37 = vld [vmem:[#allocation2 + $0x190] sm:$0xff]  ;;  %v1038_v46 = vadd.f32 %v909_v50, %v104_v56 }
 0x142   :  { %v1268_v1 = vadd.f32 %v2796_v44, %v1200_v37  ;;  %v1169_v63 = vld [vmem:[#allocation2 + $0x98] sm:$0xff]  ;;  %1134 = vst.msk [vmem:[#allocation2 + $0x198] sm:$0xff] %vm19_vm3, %v1069_v62 }
 0x143   :  { %v1237_v3 = vadd.f32 %v2796_v44, %v1169_v63  ;;  %1103 = vst.msk [vmem:[#allocation2 + $0xa0] sm:$0xff] %vm19_vm3, %v1038_v46  ;;  %v139_v46 = vld [vmem:[#allocation2 + $0x1b8] sm:$0xff] }
 0x144   :  { %v915_v61 = vpop.f32.mrf.mxu1  ;;  %v1332_v5 = vmax.f32 %v1268_v1, 0.0  ;;  %v819_v12 = vpop.f32.mrf.mxu2 }
 0x145   :  { %v1301_v6 = vmax.f32 %v1237_v3, 0.0  ;;  %v989_v13 = vadd.f32 %v988_v23, %v819_v12 }
 0x146   :  { %v1396_v39 = vpack.c.bf16 %v1332_v5, %v1332_v5  ;;  %v741_v15 = vpop.f32.mrf.mxu0 }
 0x147   :  { %v1365_v54 = vpack.c.bf16 %v1301_v6, %v1301_v6  ;;  %v911_v17 = vadd.f32 %v910_v29, %v741_v15  ;;  %v1070_v4 = vadd.f32 %v989_v13, %v136_v11  ;;  %v106_v29 = vld [vmem:[#allocation2 + $0xb0] sm:$0xff] }
 0x148   :  { %1461 = vst.msk [vmem:[%s2988_s3 + $0xc8] sm:$0xf] %vm1410_vm4, %v1396_v39 }
 0x149   :  { %1430 = vst.msk [vmem:[%s2988_s3 + $0x4c] sm:$0xf] %vm1410_vm4, %v1365_v54  ;;  %v1201_v18 = vld [vmem:[#allocation2 + $0x198] sm:$0xff]  ;;  %v1039_v14 = vadd.f32 %v911_v17, %v105_v59 }
 0x14a   :  { %v1269_v19 = vadd.f32 %v2796_v44, %v1201_v18  ;;  %v1170_v20 = vld [vmem:[#allocation2 + $0xa0] sm:$0xff]  ;;  %1135 = vst.msk [vmem:[#allocation2 + $0x1a0] sm:$0xff] %vm19_vm3, %v1070_v4 }
 0x14b   :  { %v1238_v0 = vadd.f32 %v2796_v44, %v1170_v20  ;;  %1104 = vst.msk [vmem:[#allocation2 + $0xa8] sm:$0xff] %vm19_vm3, %v1039_v14  ;;  %v998_v53 = vpop.f32.mrf.mxu3  ;;  %v140_v14 = vld [vmem:[#allocation2 + $0x1c0] sm:$0xff] }
 0x14c   :  { %v918_v22 = vpop.f32.mrf.mxu1  ;;  %v1333_v23 = vmax.f32 %v1269_v19, 0.0  ;;  %v821_v30 = vpop.f32.mrf.mxu2 }
 0x14d   :  { %v1302_v26 = vmax.f32 %v1238_v0, 0.0  ;;  %v991_v2 = vadd.f32 %v990_v47, %v821_v30 }
 0x14e   :  { %v1397_v8 = vpack.c.bf16 %v1333_v23, %v1333_v23  ;;  %v744_v31 = vpop.f32.mrf.mxu0 }
 0x14f   :  { %v1366_v34 = vpack.c.bf16 %v1302_v26, %v1302_v26  ;;  %v914_v24 = vadd.f32 %v913_v52, %v744_v31  ;;  %v1071_v21 = vadd.f32 %v991_v2, %v137_v28 }
 0x150   :  { %1462 = vst.msk [vmem:[%s2988_s3 + $0xcc] sm:$0xf] %vm1410_vm4, %v1397_v8 }
 0x151   :  { %1431 = vst.msk [vmem:[%s2988_s3 + $0x50] sm:$0xf] %vm1410_vm4, %v1366_v34  ;;  %v1202_v36 = vld [vmem:[#allocation2 + $0x1a0] sm:$0xff]  ;;  %v1040_v35 = vadd.f32 %v914_v24, %v106_v29 }
 0x152   :  { %v1270_v40 = vadd.f32 %v2796_v44, %v1202_v36  ;;  %v1171_v41 = vld [vmem:[#allocation2 + $0xa8] sm:$0xff]  ;;  %1136 = vst.msk [vmem:[#allocation2 + $0x1a8] sm:$0xff] %vm19_vm3, %v1071_v21 }
 0x153   :  { %v1239_v33 = vadd.f32 %v2796_v44, %v1171_v41  ;;  %1105 = vst.msk [vmem:[#allocation2 + $0xb0] sm:$0xff] %vm19_vm3, %v1040_v35  ;;  %v1000_v13 = vpop.f32.mrf.mxu3  ;;  %v141_v35 = vld [vmem:[#allocation2 + $0x1c8] sm:$0xff] }
 0x154   :  { %v920_v43 = vpop.f32.mrf.mxu1  ;;  %v1334_v9 = vmax.f32 %v1270_v40, 0.0  ;;  %v824_v47 = vpop.f32.mrf.mxu2 }
 0x155   :  { %v1303_v7 = vmax.f32 %v1239_v33, 0.0  ;;  %v994_v49 = vadd.f32 %v993_v58, %v824_v47 }
 0x156   :  { %v1398_v38 = vpack.c.bf16 %v1334_v9, %v1334_v9  ;;  %v746_v52 = vpop.f32.mrf.mxu0 }
 0x157   :  { %v1367_v32 = vpack.c.bf16 %v1303_v7, %v1303_v7  ;;  %v916_v48 = vadd.f32 %v915_v61, %v746_v52  ;;  %v1072_v55 = vadd.f32 %v994_v49, %v138_v45  ;;  %v108_v61 = vld [vmem:[#allocation2 + $0xc0] sm:$0xff] }
 0x158   :  { %1463 = vst.msk [vmem:[%s2988_s3 + $0xd0] sm:$0xf] %vm1410_vm4, %v1398_v38 }
 0x159   :  { %1432 = vst.msk [vmem:[%s2988_s3 + $0x54] sm:$0xf] %vm1410_vm4, %v1367_v32  ;;  %v1203_v42 = vld [vmem:[#allocation2 + $0x1a8] sm:$0xff]  ;;  %v1041_v16 = vadd.f32 %v916_v48, %v107_v51 }
 0x15a   :  { %v1271_v56 = vadd.f32 %v2796_v44, %v1203_v42  ;;  %v1172_v57 = vld [vmem:[#allocation2 + $0xb0] sm:$0xff]  ;;  %1137 = vst.msk [vmem:[#allocation2 + $0x1b0] sm:$0xff] %vm19_vm3, %v1072_v55 }
 0x15b   :  { %v1240_v60 = vadd.f32 %v2796_v44, %v1172_v57  ;;  %1106 = vst.msk [vmem:[#allocation2 + $0xb8] sm:$0xff] %vm19_vm3, %v1041_v16  ;;  %v1003_v24 = vpop.f32.mrf.mxu3  ;;  %v142_v42 = vld [vmem:[#allocation2 + $0x1d0] sm:$0xff] }
 0x15c   :  { %v923_v50 = vpop.f32.mrf.mxu1  ;;  %v1335_v62 = vmax.f32 %v1271_v56, 0.0  ;;  %v826_v1 = vpop.f32.mrf.mxu2 }
 0x15d   :  { %v1304_v37 = vmax.f32 %v1240_v60, 0.0  ;;  %v996_v3 = vadd.f32 %v995_v25, %v826_v1 }
 0x15e   :  { %v1399_v63 = vpack.c.bf16 %v1335_v62, %v1335_v62  ;;  %v749_v58 = vpop.f32.mrf.mxu0 }
 0x15f   :  { %v1368_v5 = vpack.c.bf16 %v1304_v37, %v1304_v37  ;;  %v919_v6 = vadd.f32 %v918_v22, %v749_v58  ;;  %v1073_v11 = vadd.f32 %v996_v3, %v139_v46  ;;  %v109_v22 = vld [vmem:[#allocation2 + $0xc8] sm:$0xff] }
 0x160   :  { %1464 = vst.msk [vmem:[%s2988_s3 + $0xd4] sm:$0xf] %vm1410_vm4, %v1399_v63 }
 0x161   :  { %1433 = vst.msk [vmem:[%s2988_s3 + $0x58] sm:$0xf] %vm1410_vm4, %v1368_v5  ;;  %v1204_v12 = vld [vmem:[#allocation2 + $0x1b0] sm:$0xff]  ;;  %v1042_v39 = vadd.f32 %v919_v6, %v108_v61 }
 0x162   :  { %v1272_v59 = vadd.f32 %v2796_v44, %v1204_v12  ;;  %v1173_v15 = vld [vmem:[#allocation2 + $0xb8] sm:$0xff]  ;;  %1138 = vst.msk [vmem:[#allocation2 + $0x1b8] sm:$0xff] %vm19_vm3, %v1073_v11 }
 0x163   :  { %v1241_v54 = vadd.f32 %v2796_v44, %v1173_v15  ;;  %1107 = vst.msk [vmem:[#allocation2 + $0xc0] sm:$0xff] %vm19_vm3, %v1042_v39  ;;  %v1005_v56 = vpop.f32.mrf.mxu3  ;;  %v143_v39 = vld [vmem:[#allocation2 + $0x1d8] sm:$0xff] }
 0x164   :  { %v925_v17 = vpop.f32.mrf.mxu1  ;;  %v1336_v4 = vmax.f32 %v1272_v59, 0.0  ;;  %v829_v19 = vpop.f32.mrf.mxu2 }
 0x165   :  { %v1305_v18 = vmax.f32 %v1241_v54, 0.0  ;;  %v999_v0 = vadd.f32 %v998_v53, %v829_v19  ;;  %v112_v54 = vld [vmem:[#allocation2 + $0xe0] sm:$0xff] }
 0x166   :  { %v1400_v20 = vpack.c.bf16 %v1336_v4, %v1336_v4  ;;  %v751_v23 = vpop.f32.mrf.mxu0 }
 0x167   :  { %v1369_v26 = vpack.c.bf16 %v1305_v18, %v1305_v18  ;;  %v921_v28 = vadd.f32 %v920_v43, %v751_v23  ;;  %v1074_v30 = vadd.f32 %v999_v0, %v140_v14  ;;  %v110_v43 = vld [vmem:[#allocation2 + $0xd0] sm:$0xff] }
 0x168   :  { %1465 = vst.msk [vmem:[%s2988_s3 + $0xd8] sm:$0xf] %vm1410_vm4, %v1400_v20 }
 0x169   :  { %1434 = vst.msk [vmem:[%s2988_s3 + $0x5c] sm:$0xf] %vm1410_vm4, %v1369_v26  ;;  %v1205_v25 = vld [vmem:[#allocation2 + $0x1b8] sm:$0xff]  ;;  %v1043_v8 = vadd.f32 %v921_v28, %v109_v22 }
 0x16a   :  { %v1273_v2 = vadd.f32 %v2796_v44, %v1205_v25  ;;  %v1174_v29 = vld [vmem:[#allocation2 + $0xc0] sm:$0xff]  ;;  %1139 = vst.msk [vmem:[#allocation2 + $0x1c0] sm:$0xff] %vm19_vm3, %v1074_v30 }
 0x16b   :  { %v1242_v31 = vadd.f32 %v2796_v44, %v1174_v29  ;;  %1108 = vst.msk [vmem:[#allocation2 + $0xc8] sm:$0xff] %vm19_vm3, %v1043_v8  ;;  %v1008_v18 = vpop.f32.mrf.mxu3  ;;  %v144_v8 = vld [vmem:[#allocation2 + $0x1e0] sm:$0xff] }
 0x16c   :  { %v928_v34 = vpop.f32.mrf.mxu1  ;;  %v1337_v21 = vmax.f32 %v1273_v2, 0.0  ;;  %v831_v40 = vpop.f32.mrf.mxu2 }
 0x16d   :  { %v1306_v36 = vmax.f32 %v1242_v31, 0.0  ;;  %v1001_v33 = vadd.f32 %v1000_v13, %v831_v40 }
 0x16e   :  { %v1401_v41 = vpack.c.bf16 %v1337_v21, %v1337_v21  ;;  %v754_v9 = vpop.f32.mrf.mxu0 }
 0x16f   :  { %v1370_v7 = vpack.c.bf16 %v1306_v36, %v1306_v36  ;;  %v924_v45 = vadd.f32 %v923_v50, %v754_v9  ;;  %v1075_v47 = vadd.f32 %v1001_v33, %v141_v35  ;;  %v111_v50 = vld [vmem:[#allocation2 + $0xd8] sm:$0xff] }
 0x170   :  { %1466 = vst.msk [vmem:[%s2988_s3 + $0xdc] sm:$0xf] %vm1410_vm4, %v1401_v41 }
 0x171   :  { %1435 = vst.msk [vmem:[%s2988_s3 + $0x60] sm:$0xf] %vm1410_vm4, %v1370_v7  ;;  %v1206_v38 = vld [vmem:[#allocation2 + $0x1c0] sm:$0xff]  ;;  %v1044_v49 = vadd.f32 %v924_v45, %v110_v43 }
 0x172   :  { %v1274_v51 = vadd.f32 %v2796_v44, %v1206_v38  ;;  %v1175_v52 = vld [vmem:[#allocation2 + $0xc8] sm:$0xff]  ;;  %1140 = vst.msk [vmem:[#allocation2 + $0x1c8] sm:$0xff] %vm19_vm3, %v1075_v47  ;;  %v116_v45 = vld [vmem:[#allocation2 + $0x100] sm:$0xff] }
 0x173   :  { %v1243_v32 = vadd.f32 %v2796_v44, %v1175_v52  ;;  %1109 = vst.msk [vmem:[#allocation2 + $0xd0] sm:$0xff] %vm19_vm3, %v1044_v49  ;;  %v1010_v41 = vpop.f32.mrf.mxu3  ;;  %v145_v52 = vld [vmem:[#allocation2 + $0x1e8] sm:$0xff] }
 0x174   :  { %v930_v48 = vpop.f32.mrf.mxu1  ;;  %v1338_v53 = vmax.f32 %v1274_v51, 0.0  ;;  %v834_v16 = vpop.f32.mrf.mxu2 }
 0x175   :  { %v1307_v55 = vmax.f32 %v1243_v32, 0.0  ;;  %v1004_v60 = vadd.f32 %v1003_v24, %v834_v16 }
 0x176   :  { %v1402_v57 = vpack.c.bf16 %v1338_v53, %v1338_v53  ;;  %v756_v62 = vpop.f32.mrf.mxu0 }
 0x177   :  { %v1371_v37 = vpack.c.bf16 %v1307_v55, %v1307_v55  ;;  %v926_v46 = vadd.f32 %v925_v17, %v756_v62  ;;  %v1076_v1 = vadd.f32 %v1004_v60, %v142_v42  ;;  %v114_v42 = vld [vmem:[#allocation2 + $0xf0] sm:$0xff] }
 0x178   :  { %1467 = vst.msk [vmem:[%s2988_s3 + $0xe0] sm:$0xf] %vm1410_vm4, %v1402_v57 }
 0x179   :  { %1436 = vst.msk [vmem:[%s2988_s3 + $0x64] sm:$0xf] %vm1410_vm4, %v1371_v37  ;;  %v1207_v63 = vld [vmem:[#allocation2 + $0x1c8] sm:$0xff]  ;;  %v1045_v3 = vadd.f32 %v926_v46, %v111_v50 }
 0x17a   :  { %v1275_v61 = vadd.f32 %v2796_v44, %v1207_v63  ;;  %v1176_v58 = vld [vmem:[#allocation2 + $0xd0] sm:$0xff]  ;;  %1141 = vst.msk [vmem:[#allocation2 + $0x1d0] sm:$0xff] %vm19_vm3, %v1076_v1  ;;  %v117_v63 = vld [vmem:[#allocation2 + $0x108] sm:$0xff] }
 0x17b   :  { %v1244_v5 = vadd.f32 %v2796_v44, %v1176_v58  ;;  %1110 = vst.msk [vmem:[#allocation2 + $0xd8] sm:$0xff] %vm19_vm3, %v1045_v3  ;;  %v1013_v1 = vpop.f32.mrf.mxu3 }
 0x17c   :  { %v933_v6 = vpop.f32.mrf.mxu1  ;;  %v1339_v11 = vmax.f32 %v1275_v61, 0.0  ;;  %v836_v13 = vpop.f32.mrf.mxu2 }
 0x17d   :  { %v1308_v12 = vmax.f32 %v1244_v5, 0.0  ;;  %v1006_v15 = vadd.f32 %v1005_v56, %v836_v13 }
 0x17e   :  { %v1403_v59 = vpack.c.bf16 %v1339_v11, %v1339_v11  ;;  %v759_v17 = vpop.f32.mrf.mxu0 }
 0x17f   :  { %v1372_v4 = vpack.c.bf16 %v1308_v12, %v1308_v12  ;;  %v929_v14 = vadd.f32 %v928_v34, %v759_v17  ;;  %v1077_v19 = vadd.f32 %v1006_v15, %v143_v39  ;;  %v113_v34 = vld [vmem:[#allocation2 + $0xe8] sm:$0xff] }
 0x180   :  { %1468 = vst.msk [vmem:[%s2988_s3 + $0xe4] sm:$0xf] %vm1410_vm4, %v1403_v59  ;;  %v115_v59 = vld [vmem:[#allocation2 + $0xf8] sm:$0xff] }
 0x181   :  { %1437 = vst.msk [vmem:[%s2988_s3 + $0x68] sm:$0xf] %vm1410_vm4, %v1372_v4  ;;  %v1208_v20 = vld [vmem:[#allocation2 + $0x1d0] sm:$0xff]  ;;  %v1046_v0 = vadd.f32 %v929_v14, %v112_v54 }
 0x182   :  { %v1276_v22 = vadd.f32 %v2796_v44, %v1208_v20  ;;  %v1177_v23 = vld [vmem:[#allocation2 + $0xd8] sm:$0xff]  ;;  %1142 = vst.msk [vmem:[#allocation2 + $0x1d8] sm:$0xff] %vm19_vm3, %v1077_v19 }
 0x183   :  { %v1245_v26 = vadd.f32 %v2796_v44, %v1177_v23  ;;  %1111 = vst.msk [vmem:[#allocation2 + $0xe0] sm:$0xff] %vm19_vm3, %v1046_v0 }
 0x184   :  { %v935_v28 = vpop.f32.mrf.mxu1  ;;  %v1340_v30 = vmax.f32 %v1276_v22, 0.0  ;;  %v839_v2 = vpop.f32.mrf.mxu2 }
 0x185   :  { %v1309_v25 = vmax.f32 %v1245_v26, 0.0  ;;  %v1009_v31 = vadd.f32 %v1008_v18, %v839_v2 }
 0x186   :  { %v1404_v29 = vpack.c.bf16 %v1340_v30, %v1340_v30  ;;  %v761_v24 = vpop.f32.mrf.mxu0  ;;  %v147_v30 = vld [vmem:[#allocation2 + $0x1f8] sm:$0xff] }
 0x187   :  { %v1373_v21 = vpack.c.bf16 %v1309_v25, %v1309_v25  ;;  %v931_v36 = vadd.f32 %v930_v48, %v761_v24  ;;  %v1078_v35 = vadd.f32 %v1009_v31, %v144_v8 }
 0x188   :  { %1469 = vst.msk [vmem:[%s2988_s3 + $0xe8] sm:$0xf] %vm1410_vm4, %v1404_v29 }
 0x189   :  { %1438 = vst.msk [vmem:[%s2988_s3 + $0x6c] sm:$0xf] %vm1410_vm4, %v1373_v21  ;;  %v1209_v40 = vld [vmem:[#allocation2 + $0x1d8] sm:$0xff]  ;;  %v1047_v33 = vadd.f32 %v931_v36, %v113_v34 }
 0x18a   :  { %v1277_v43 = vadd.f32 %v2796_v44, %v1209_v40  ;;  %v1178_v9 = vld [vmem:[#allocation2 + $0xe0] sm:$0xff]  ;;  %1143 = vst.msk [vmem:[#allocation2 + $0x1e0] sm:$0xff] %vm19_vm3, %v1078_v35 }
 0x18b   :  { %v1246_v7 = vadd.f32 %v2796_v44, %v1178_v9  ;;  %1112 = vst.msk [vmem:[#allocation2 + $0xe8] sm:$0xff] %vm19_vm3, %v1047_v33 }
 0x18c   :  { %v938_v47 = vpop.f32.mrf.mxu1  ;;  %v1341_v38 = vmax.f32 %v1277_v43, 0.0  ;;  %v841_v32 = vpop.f32.mrf.mxu2 }
 0x18d   :  { %v939_v49 = vadd.f32 %v938_v47, %v2283_v10  ;;  %v1310_v51 = vmax.f32 %v1246_v7, 0.0  ;;  %v1011_v55 = vadd.f32 %v1010_v41, %v841_v32 }
 0x18e   :  { %v1405_v48 = vpack.c.bf16 %v1341_v38, %v1341_v38  ;;  %v764_v16 = vpop.f32.mrf.mxu0 }
 0x18f   :  { %v1050_v53 = vadd.f32 %v939_v49, %v116_v45  ;;  %v1374_v56 = vpack.c.bf16 %v1310_v51, %v1310_v51  ;;  %v934_v57 = vadd.f32 %v933_v6, %v764_v16  ;;  %v1079_v60 = vadd.f32 %v1011_v55, %v145_v52  ;;  %v146_v6 = vld [vmem:[#allocation2 + $0x1f0] sm:$0xff] }
 0x190   :  { %1470 = vst.msk [vmem:[%s2988_s3 + $0xec] sm:$0xf] %vm1410_vm4, %v1405_v48 }
 0x191   :  { %1439 = vst.msk [vmem:[%s2988_s3 + $0x70] sm:$0xf] %vm1410_vm4, %v1374_v56  ;;  %v1210_v10 = vld [vmem:[#allocation2 + $0x1e0] sm:$0xff]  ;;  %v1048_v50 = vadd.f32 %v934_v57, %v114_v42 }
 0x192   :  { %v1278_v62 = vadd.f32 %v2796_v44, %v1210_v10  ;;  %v1179_v37 = vld [vmem:[#allocation2 + $0xe8] sm:$0xff]  ;;  %1115 = vst.msk [vmem:[#allocation2 + $0x100] sm:$0xff] %vm19_vm3, %v1050_v53 }
 0x193   :  { %v1247_v46 = vadd.f32 %v2796_v44, %v1179_v37  ;;  %1144 = vst.msk [vmem:[#allocation2 + $0x1e8] sm:$0xff] %vm19_vm3, %v1079_v60 }
 0x194   :  { %v940_v3 = vpop.f32.mrf.mxu1  ;;  %v1342_v61 = vmax.f32 %v1278_v62, 0.0  ;;  %1113 = vst.msk [vmem:[#allocation2 + $0xf0] sm:$0xff] %vm19_vm3, %v1048_v50  ;;  %v844_v11 = vpop.f32.mrf.mxu2 }
 0x195   :  { %v941_v58 = vadd.f32 %v940_v3, %v2331_v27  ;;  %v1311_v5 = vmax.f32 %v1247_v46, 0.0  ;;  %v1014_v13 = vadd.f32 %v1013_v1, %v844_v11 }
 0x196   :  { %v1406_v12 = vpack.c.bf16 %v1342_v61, %v1342_v61  ;;  %v766_v15 = vpop.f32.mrf.mxu0 }
 0x197   :  { %v1051_v39 = vadd.f32 %v941_v58, %v117_v63  ;;  %v1375_v54 = vpack.c.bf16 %v1311_v5, %v1311_v5  ;;  %v936_v17 = vadd.f32 %v935_v28, %v766_v15  ;;  %v1080_v4 = vadd.f32 %v1014_v13, %v146_v6  ;;  %v1015_v28 = vpop.f32.mrf.mxu3 }
 0x198   :  { %1471 = vst.msk [vmem:[%s2988_s3 + $0xf0] sm:$0xf] %vm1410_vm4, %v1406_v12 }
 0x199   :  { %1440 = vst.msk [vmem:[%s2988_s3 + $0x74] sm:$0xf] %vm1410_vm4, %v1375_v54  ;;  %v1182_v27 = vld [vmem:[#allocation2 + $0x100] sm:$0xff]  ;;  %v1049_v18 = vadd.f32 %v936_v17, %v115_v59 }
 0x19a   :  { %v1250_v14 = vadd.f32 %v2796_v44, %v1182_v27  ;;  %v1211_v19 = vld [vmem:[#allocation2 + $0x1e8] sm:$0xff]  ;;  %1116 = vst.msk [vmem:[#allocation2 + $0x108] sm:$0xff] %vm19_vm3, %v1051_v39 }
 0x19b   :  { %v1279_v20 = vadd.f32 %v2796_v44, %v1211_v19  ;;  %v1180_v0 = vld [vmem:[#allocation2 + $0xf0] sm:$0xff]  ;;  %1145 = vst.msk [vmem:[#allocation2 + $0x1f0] sm:$0xff] %vm19_vm3, %v1080_v4 }
 0x19c   :  { %v1314_v22 = vmax.f32 %v1250_v14, 0.0  ;;  %v1248_v23 = vadd.f32 %v2796_v44, %v1180_v0  ;;  %1114 = vst.msk [vmem:[#allocation2 + $0xf8] sm:$0xff] %vm19_vm3, %v1049_v18  ;;  %v846_v25 = vpop.f32.mrf.mxu2 }
 0x19d   :  { %v1343_v26 = vmax.f32 %v1279_v20, 0.0  ;;  %v1016_v29 = vadd.f32 %v1015_v28, %v846_v25 }
 0x19e   :  { %v1378_v8 = vpack.c.bf16 %v1314_v22, %v1314_v22  ;;  %v1312_v2 = vmax.f32 %v1248_v23, 0.0 }
 0x19f   :  { %v1407_v31 = vpack.c.bf16 %v1343_v26, %v1343_v26  ;;  %v1081_v24 = vadd.f32 %v1016_v29, %v147_v30 }
 0x1a0   :  { %1443 = vst.msk [vmem:[%s2988_s3 + $0x80] sm:$0xf] %vm1410_vm4, %v1378_v8  ;;  %v1376_v34 = vpack.c.bf16 %v1312_v2, %v1312_v2 }
 0x1a1   :  { %1472 = vst.msk [vmem:[%s2988_s3 + $0xf4] sm:$0xf] %vm1410_vm4, %v1407_v31  ;;  %v1183_v21 = vld [vmem:[#allocation2 + $0x108] sm:$0xff] }
 0x1a2   :  { %1441 = vst.msk [vmem:[%s2988_s3 + $0x78] sm:$0xf] %vm1410_vm4, %v1376_v34  ;;  %v1251_v36 = vadd.f32 %v2796_v44, %v1183_v21  ;;  %v1212_v35 = vld [vmem:[#allocation2 + $0x1f0] sm:$0xff] }
 0x1a3   :  { %v1280_v40 = vadd.f32 %v2796_v44, %v1212_v35  ;;  %v1181_v41 = vld [vmem:[#allocation2 + $0xf8] sm:$0xff]  ;;  %1146 = vst.msk [vmem:[#allocation2 + $0x1f8] sm:$0xff] %vm19_vm3, %v1081_v24 }
 0x1a4   :  { %v1315_v33 = vmax.f32 %v1251_v36, 0.0  ;;  %v1249_v43 = vadd.f32 %v2796_v44, %v1181_v41 }
 0x1a5   :  { %v1344_v9 = vmax.f32 %v1280_v40, 0.0 }
 0x1a6   :  { %v1379_v7 = vpack.c.bf16 %v1315_v33, %v1315_v33  ;;  %v1313_v45 = vmax.f32 %v1249_v43, 0.0 }
 0x1a7   :  { %v1408_v47 = vpack.c.bf16 %v1344_v9, %v1344_v9 }
 0x1a8   :  { %1444 = vst.msk [vmem:[%s2988_s3 + $0x84] sm:$0xf] %vm1410_vm4, %v1379_v7  ;;  %v1377_v38 = vpack.c.bf16 %v1313_v45, %v1313_v45 }
 0x1a9   :  { %1473 = vst.msk [vmem:[%s2988_s3 + $0xf8] sm:$0xf] %vm1410_vm4, %v1408_v47 }
 0x1aa   :  { %1442 = vst.msk [vmem:[%s2988_s3 + $0x7c] sm:$0xf] %vm1410_vm4, %v1377_v38  ;;  %v1213_v49 = vld [vmem:[#allocation2 + $0x1f8] sm:$0xff] }
 0x1ab   :  { %v1281_v51 = vadd.f32 %v2796_v44, %v1213_v49 }
 0x1ad   :  { %v1345_v52 = vmax.f32 %v1281_v51, 0.0 }
 0x1af   :  { %v1409_v32 = vpack.c.bf16 %v1345_v52, %v1345_v52 }
 0x1b1   :  { %1474 = vst.msk [vmem:[%s2988_s3 + $0xfc] sm:$0xf] %vm1410_vm4, %v1409_v32 }

</bundles_post_ra>
